<compile_context>
chip_gen: v7x
topology: tpu7x:2x2x1
jax: 0.10.0
libtpu: 0.0.40
codegen_flags: <defaults>
</compile_context>

<pallas_src>
import jax
import jax.numpy as jnp
from jax.experimental import pallas as pl
from jax.experimental.pallas import tpu as pltpu

D = 80 * 80   # 6400
H = 200
HP = 256      # H padded to a lane multiple (zero-padded; mathematically a no-op)


def _mlp_kernel(x_ref, w1_ref, b1_ref, w2_ref, b2_ref, o_ref, acc_ref):
    k = pl.program_id(0)

    @pl.when(k == 0)
    def _():
        acc_ref[...] = jnp.zeros_like(acc_ref)

    # Partial product over the D (reduction) tile:
    # bf16 [B, tk] @ bf16 [tk, HP], accumulated in f32 on the MXU.
    acc_ref[...] += jnp.dot(
        x_ref[...], w1_ref[...], preferred_element_type=jnp.float32
    )

    @pl.when(k == pl.num_programs(0) - 1)
    def _():
        h = jnp.tanh(acc_ref[...] + b1_ref[...])            # [B, HP] f32
        logits = jnp.dot(
            h, w2_ref[...], preferred_element_type=jnp.float32
        ) + b2_ref[...]                                      # [B, A]  f32
        m = jnp.max(logits, axis=-1, keepdims=True)
        e = jnp.exp(logits - m)
        probs = e / jnp.sum(e, axis=-1, keepdims=True)
        o_ref[...] = probs.astype(o_ref.dtype)


def prepare_params(w1, b1, w2, b2, hp=HP):
    """One-time weight preprocessing (do NOT call per step):
    zero-pad H -> hp for lane alignment and cast W1 to bf16 to halve HBM bytes.
    Expects weights already in [in, out] layout: w1 [D, H], w2 [H, A]."""
    Din, Hh = w1.shape
    A = w2.shape[1]
    assert Din == D and b1.shape == (Hh,) and w2.shape[0] == Hh and b2.shape == (A,)
    pad = hp - Hh
    assert pad >= 0
    w1p = jnp.pad(w1, ((0, 0), (0, pad))).astype(jnp.bfloat16)      # [D, HP] bf16
    b1p = jnp.pad(b1, (0, pad)).reshape(1, hp).astype(jnp.float32)  # [1, HP]
    w2p = jnp.pad(w2, ((0, pad), (0, 0))).astype(jnp.float32)       # [HP, A]
    b2p = b2.reshape(1, A).astype(jnp.float32)                      # [1, A]
    return w1p, b1p, w2p, b2p


def simple_mlp_forward(obs, w1p, b1p, w2p, b2p, *, tk=3200):
    """obs: [B, D] f32; prepared params from prepare_params -> [B, A] f32 probs."""
    B, Din = obs.shape
    assert Din == D and Din % tk == 0 and tk % 128 == 0
    Hp = w1p.shape[1]
    A = w2p.shape[1]

    # Sublane-align the batch (pad to a multiple of 8) and cast obs to bf16 to
    # match the bf16 W1 stream.  Padded rows are sliced off below.
    BP = max(8, -(-B // 8) * 8)
    x = obs.astype(jnp.bfloat16)
    if BP != B:
        x = jnp.pad(x, ((0, BP - B), (0, 0)))

    grid = (Din // tk,)
    out = pl.pallas_call(
        _mlp_kernel,
        out_shape=jax.ShapeDtypeStruct((BP, A), jnp.float32),
        grid_spec=pltpu.PrefetchScalarGridSpec(
            num_scalar_prefetch=0,
            grid=grid,
            in_specs=[
                pl.BlockSpec((BP, tk), lambda k: (0, k)),   # obs tile   (bf16)
                pl.BlockSpec((tk, Hp), lambda k: (k, 0)),   # W1 tile    (bf16)
                pl.BlockSpec((1, Hp), lambda k: (0, 0)),    # b1 (VMEM-resident)
                pl.BlockSpec((Hp, A), lambda k: (0, 0)),    # W2 (VMEM-resident)
                pl.BlockSpec((1, A), lambda k: (0, 0)),     # b2 (VMEM-resident)
            ],
            out_specs=pl.BlockSpec((BP, A), lambda k: (0, 0)),
            scratch_shapes=[pltpu.VMEM((BP, Hp), jnp.float32)],
        ),
        compiler_params=pltpu.CompilerParams(
            dimension_semantics=("arbitrary",),  # reduction axis
        ),
    )(x, w1p, b1p, w2p, b2p)

    return out[:B] if BP != B else out


if __name__ == "__main__":
    action_n = 6
    batch = 2

    key = jax.random.PRNGKey(0)
    k_obs, k_w1, k_b1, k_w2, k_b2 = jax.random.split(key, 5)

    # Deterministic "uniform(-1/sqrt(fan_in), 1/sqrt(fan_in))"-style init
    # (same distribution family as nn.Linear's default; values are synthetic).
    lim1 = 1.0 / (D ** 0.5)
    lim2 = 1.0 / (H ** 0.5)
    obs = jax.random.normal(k_obs, (batch, D), dtype=jnp.float32)
    w1 = jax.random.uniform(k_w1, (D, H), jnp.float32, -lim1, lim1)
    b1 = jax.random.uniform(k_b1, (H,), jnp.float32, -lim1, lim1)
    w2 = jax.random.uniform(k_w2, (H, action_n), jnp.float32, -lim2, lim2)
    b2 = jax.random.uniform(k_b2, (action_n,), jnp.float32, -lim2, lim2)

    # One-time param prep (pad H to 256, cast W1 to bf16).
    params = prepare_params(w1, b1, w2, b2)
    params = jax.block_until_ready(params)

    out = simple_mlp_forward(obs, *params)
    out = jax.block_until_ready(out)

    # Pure-JAX f32 reference; tolerance loosened for the bf16 first matmul.
    h_ref = jnp.tanh(obs @ w1 + b1)
    ref = jax.nn.softmax(h_ref @ w2 + b2, axis=-1)
    assert out.shape == (batch, action_n)
    assert jnp.allclose(out, ref, atol=1e-2, rtol=2e-2), float(jnp.max(jnp.abs(out - ref)))
    assert jnp.allclose(jnp.sum(out, axis=-1), 1.0, atol=1e-5)

    print("KERNEL_OK")
</pallas_src>

<mosaic_0001>
module attributes {stable_mosaic.version = 11 : i64} {
  func.func @_mlp_kernel(%arg0: i32, %arg1: memref<8x3200xbf16, #tpu.memory_space<vmem>>, %arg2: memref<3200x256xbf16, #tpu.memory_space<vmem>>, %arg3: memref<1x256xf32, #tpu.memory_space<vmem>>, %arg4: memref<256x6xf32, #tpu.memory_space<vmem>>, %arg5: memref<1x6xf32, #tpu.memory_space<vmem>>, %arg6: memref<8x6xf32, #tpu.memory_space<vmem>>, %arg7: memref<8x256xf32, #tpu.memory_space<vmem>>) attributes {dimension_semantics = [#tpu.dimension_semantics<arbitrary>], iteration_bounds = array<i64: 2>, scalar_prefetch = 0 : i64, scratch_operands = 1 : i64, tpu.core_type = #tpu.core_type<tc>, window_params = [{transform_indices = @transform_0, window_bounds = array<i64: 8, 3200>}, {transform_indices = @transform_1, window_bounds = array<i64: 3200, 256>}, {pipeline_mode = #tpu.pipeline_mode<synchronous>, transform_indices = @transform_2, window_bounds = array<i64: 1, 256>}, {pipeline_mode = #tpu.pipeline_mode<synchronous>, transform_indices = @transform_3, window_bounds = array<i64: 256, 6>}, {pipeline_mode = #tpu.pipeline_mode<synchronous>, transform_indices = @transform_4, window_bounds = array<i64: 1, 6>}, {pipeline_mode = #tpu.pipeline_mode<synchronous>, transform_indices = @transform_5, window_bounds = array<i64: 8, 6>}]} {
    %c0_i32 = arith.constant 0 : i32
    %0 = arith.cmpi eq, %arg0, %c0_i32 : i32
    %1 = arith.extui %0 : i1 to i32
    %c0_i32_0 = arith.constant 0 : i32
    %2 = arith.cmpi ne, %1, %c0_i32_0 : i32
    scf.if %2 {
      %cst_9 = arith.constant 0.000000e+00 : f32
      %12 = vector.broadcast %cst_9 : f32 to vector<8x256xf32>
      %c0_10 = arith.constant 0 : index
      %c0_11 = arith.constant 0 : index
      %13 = vector.load %arg7[%c0_10, %c0_11] : memref<8x256xf32, #tpu.memory_space<vmem>>, vector<8x256xf32>
      tpu.vector_store %arg7[%c0_10, %c0_11], %12 {strides = array<i32>} : memref<8x256xf32, #tpu.memory_space<vmem>>, vector<8x256xf32>,
    } else {
    }
    %c0 = arith.constant 0 : index
    %c0_1 = arith.constant 0 : index
    %3 = vector.load %arg7[%c0, %c0_1] : memref<8x256xf32, #tpu.memory_space<vmem>>, vector<8x256xf32>
    %c0_2 = arith.constant 0 : index
    %c0_3 = arith.constant 0 : index
    %4 = vector.load %arg1[%c0_2, %c0_3] : memref<8x3200xbf16, #tpu.memory_space<vmem>>, vector<8x3200xbf16>
    %c0_4 = arith.constant 0 : index
    %c0_5 = arith.constant 0 : index
    %5 = vector.load %arg2[%c0_4, %c0_5] : memref<3200x256xbf16, #tpu.memory_space<vmem>>, vector<3200x256xbf16>
    %cst = arith.constant dense<0.000000e+00> : vector<8x256xf32>
    %6 = tpu.matmul %4, %5, %cst {dimension_numbers = #tpu.dot_dimension_numbers<[1], [0], [0], [1], [0, 0, 1, 1], [], []>} : vector<8x3200xbf16>, vector<3200x256xbf16>, vector<8x256xf32> -> vector<8x256xf32>
    %7 = arith.addf %3, %6 : vector<8x256xf32>
    %c0_6 = arith.constant 0 : index
    %c0_7 = arith.constant 0 : index
    %8 = vector.load %arg7[%c0_6, %c0_7] : memref<8x256xf32, #tpu.memory_space<vmem>>, vector<8x256xf32>
    tpu.vector_store %arg7[%c0_6, %c0_7], %7 {strides = array<i32>} : memref<8x256xf32, #tpu.memory_space<vmem>>, vector<8x256xf32>,
    %c1_i32 = arith.constant 1 : i32
    %9 = arith.cmpi eq, %arg0, %c1_i32 : i32
    %10 = arith.extui %9 : i1 to i32
    %c0_i32_8 = arith.constant 0 : i32
    %11 = arith.cmpi ne, %10, %c0_i32_8 : i32
    scf.if %11 {
      %c0_9 = arith.constant 0 : index
      %c0_10 = arith.constant 0 : index
      %12 = vector.load %arg7[%c0_9, %c0_10] : memref<8x256xf32, #tpu.memory_space<vmem>>, vector<8x256xf32>
      %c0_11 = arith.constant 0 : index
      %c0_12 = arith.constant 0 : index
      %13 = vector.load %arg3[%c0_11, %c0_12] : memref<1x256xf32, #tpu.memory_space<vmem>>, vector<1x256xf32>
      %14 = vector.broadcast %13 : vector<1x256xf32> to vector<8x256xf32>
      %15 = arith.addf %12, %14 : vector<8x256xf32>
      %16 = math.tanh %15 : vector<8x256xf32>
      %c0_13 = arith.constant 0 : index
      %c0_14 = arith.constant 0 : index
      %17 = vector.load %arg4[%c0_13, %c0_14] : memref<256x6xf32, #tpu.memory_space<vmem>>, vector<256x6xf32>
      %cst_15 = arith.constant dense<0.000000e+00> : vector<8x6xf32>
      %18 = tpu.matmul %16, %17, %cst_15 {dimension_numbers = #tpu.dot_dimension_numbers<[1], [0], [0], [1], [0, 0, 1, 1], [], []>} : vector<8x256xf32>, vector<256x6xf32>, vector<8x6xf32> -> vector<8x6xf32>
      %c0_16 = arith.constant 0 : index
      %c0_17 = arith.constant 0 : index
      %19 = vector.load %arg5[%c0_16, %c0_17] : memref<1x6xf32, #tpu.memory_space<vmem>>, vector<1x6xf32>
      %20 = vector.broadcast %19 : vector<1x6xf32> to vector<8x6xf32>
      %21 = arith.addf %18, %20 : vector<8x6xf32>
      %cst_18 = arith.constant dense<0xFF800000> : vector<8xf32>
      %22 = vector.multi_reduction <maximumf>, %21, %cst_18 [1] : vector<8x6xf32> to vector<8xf32>
      %23 = vector.shape_cast %22 : vector<8xf32> to vector<8x1xf32>
      %24 = vector.broadcast %23 : vector<8x1xf32> to vector<8x6xf32>
      %25 = arith.subf %21, %24 : vector<8x6xf32>
      %26 = math.exp %25 : vector<8x6xf32>
      %cst_19 = arith.constant dense<0.000000e+00> : vector<8xf32>
      %27 = vector.multi_reduction <add>, %26, %cst_19 [1] : vector<8x6xf32> to vector<8xf32>
      %28 = vector.shape_cast %27 : vector<8xf32> to vector<8x1xf32>
      %29 = vector.broadcast %28 : vector<8x1xf32> to vector<8x6xf32>
      %30 = arith.divf %26, %29 : vector<8x6xf32>
      %c0_20 = arith.constant 0 : index
      %c0_21 = arith.constant 0 : index
      %31 = vector.load %arg6[%c0_20, %c0_21] : memref<8x6xf32, #tpu.memory_space<vmem>>, vector<8x6xf32>
      tpu.vector_store %arg6[%c0_20, %c0_21], %30 {strides = array<i32>} : memref<8x6xf32, #tpu.memory_space<vmem>>, vector<8x6xf32>,
    } else {
    }
    return
  }
  func.func @transform_0(%arg0: i32) -> (i32, i32) {
    %c0_i32 = arith.constant 0 : i32
    %c0_i32_0 = arith.constant 0 : i32
    return %c0_i32, %arg0 : i32, i32
  }
  func.func @transform_1(%arg0: i32) -> (i32, i32) {
    %c0_i32 = arith.constant 0 : i32
    %c0_i32_0 = arith.constant 0 : i32
    return %arg0, %c0_i32 : i32, i32
  }
  func.func @transform_2(%arg0: i32) -> (i32, i32) {
    %c0_i32 = arith.constant 0 : i32
    %c0_i32_0 = arith.constant 0 : i32
    %c0_i32_1 = arith.constant 0 : i32
    return %c0_i32, %c0_i32_0 : i32, i32
  }
  func.func @transform_3(%arg0: i32) -> (i32, i32) {
    %c0_i32 = arith.constant 0 : i32
    %c0_i32_0 = arith.constant 0 : i32
    %c0_i32_1 = arith.constant 0 : i32
    return %c0_i32, %c0_i32_0 : i32, i32
  }
  func.func @transform_4(%arg0: i32) -> (i32, i32) {
    %c0_i32 = arith.constant 0 : i32
    %c0_i32_0 = arith.constant 0 : i32
    %c0_i32_1 = arith.constant 0 : i32
    return %c0_i32, %c0_i32_0 : i32, i32
  }
  func.func @transform_5(%arg0: i32) -> (i32, i32) {
    %c0_i32 = arith.constant 0 : i32
    %c0_i32_0 = arith.constant 0 : i32
    %c0_i32_1 = arith.constant 0 : i32
    return %c0_i32, %c0_i32_0 : i32, i32
  }
}

</mosaic_0001>

<bundles_post_ra>
// kernel: tpu_custom_call.1
= control target key start
LH: loop header
LB: loop body
LE: loop exit
PB: predicated region body
PF: predicated region fallthrough
CT: control target
= control target key end

     0   :  { %10 = vsyncpa [#allocation4], 0  ;;  %s5881_s0 = inlined_call_operand.hbm [shape: bf16[8,6400], index: 0, kind: input, shape index: {}]   ;;  %s5882_s1 = inlined_call_operand.hbm [shape: bf16[6400,256], index: 1, kind: input, shape index: {}]   ;;  %s5883_s2 = inlined_call_operand.hbm [shape: f32[1,256], index: 2, kind: input, shape index: {}]   ;;  %s5884_s3 = inlined_call_operand.vmem [shape: f32[256,6], index: 3, kind: input, shape index: {}]   ;;  %s5885_s4 = inlined_call_operand.hbm [shape: f32[1,6], index: 4, kind: input, shape index: {}]   ;;  %s5886_s5 = inlined_call_operand.hbm [shape: f32[8,6], index: 5, kind: output, shape index: {}]  }
   0x1   :  { %12 = vsyncpa [#allocation4 + $0x1], 0 }
   0x2   :  { %13 = vsyncpa [#allocation7], 0 }
   0x3   :  { %15 = vsyncpa [#allocation7 + $0x1], 0 }
   0x4   :  { %16 = vsyncpa [#allocation10], 0 }
   0x5   :  { %17 = vsyncpa [#allocation5], 0  ;;  %s5047_s18 = smov 0   ;;  %s5049_s19 = smov 0  }
   0x6   :  { %s5051_s20 = smov 0   ;;  %s5053_s21 = smov 0  }
   0x7 LB: > { %s5066_s22 = sadd.s32 4294967295, %s5006_s21   ;;  %p43_p0 = scmp.ne.s32.totalorder %s4998_s19, %s4994_s18  ;;  %s5006_s21 = sphi %s5053_s21, %s5904_s21   ;;  %s5002_s20 = sphi %s5051_s20, %s5903_s20   ;;  %s4998_s19 = sphi %s5049_s19, %s5902_s19   ;;  %s4994_s18 = sphi %s5047_s18, %s5901_s18  }
   0x8   : > { %p5887_p1 = scmp.eq.s32.totalorder %s5066_s22, 0  ;;  %p3588_p2 = scmp.ge.s32.totalorder %s5006_s21, 1 }
   0x9   : > { %p164_p3 = scmp.lt.s32.totalorder %s5006_s21, 3  ;;  %s5008_s25 = smov [#allocation8]  }
   0xa   : > { %p5075_p5 = por %p5887_p1, %p43_p0  ;;  %s177_s26 = sshll.u32 %s5008_s25, 4  ;;  %s178_s26 = int_to_ptr.vmem [resolvable:$true] %s177_s26 }
   0xb   : > { %p5079_p6 = pnand %p3588_p2, %p164_p3  ;;  %s5009_s27 = smov [#allocation9]  }
   0xc   : > { %s5890_s23 = scalar_select %p5075_p5, 1, 0 }
   0xd   : > { %s5891_s24 = scalar_select %p5079_p6, 1, 0 }
   0xe   : > { %p4121_p7 = pneg %p5079_p6  ;;  %s191_s28 = sshll.u32 %s5009_s27, 4  ;;  %s5091_s28 = int_to_ptr.vmem [resolvable:$true] %s191_s28 }
   0xf   : > { %s5094_s30 = sadd.s32 1, %s5006_s21   ;;  %s4814_s9 = scalar_lea.hbm %s5883_s2, 32 }
  0x10   : > { %p5087_p8 = pnand %p4121_p7, %p5887_p1  ;;  %s27_s6 = ssub.s32 %s5006_s21, %s5094_s30 }
  0x11   : > { %p4815_p9 = scmp.ne.s32.totalorder %s5883_s2, %s4814_s9  ;;  %p4821_p13 = scmp.lt.u32.totalorder %s4814_s9, %s5883_s2 }
  0x12   : > { %p4816_p10 = pneg %p5087_p8 }
  0x14   : > { %p4817_p11 = pnand %p4816_p10, %p4815_p9 }
  0x16   : > { %p4818_p12 = pneg %p4817_p11 }
  0x18   : > { %p4823_p0 = pnand %p4821_p13, %p4818_p12 }
  0x1a   : > { %4826 = shalt.err (!%p4823_p0)
}
  0x1b   : > { %s4827_s14 = scalar_lea.vmem %s178_s26, 32  ;;  %p4835_p4 = scmp.lt.s32.totalorder %s178_s26, %s178_s26 }
  0x1c   : > { %p4828_p2 = scmp.ne.s32.totalorder %s178_s26, %s4827_s14  ;;  %p4836_p1 = scmp.lt.s32.totalorder %s4827_s14, %s4827_s14 }
  0x1e   : > { %p4830_p3 = pnand %p4828_p2, %p4816_p10  ;;  %p4837_p5 = por %p4836_p1, %p4835_p4 }
  0x20   : > { %p4831_p7 = pneg %p4830_p3 }
  0x22   : > { %p4838_p6 = pnand %p4837_p5, %p4831_p7 }
  0x24   : > { %4841 = shalt.err (!%p4838_p6)
}
  0x25   : > { %4124 = dma.hbm_to_vmem [thread:$0]  (!%p5087_p8), %s5883_s2, 32, %s178_s26, [#allocation7]  }
  0x26   : > { %s4842_s25 = scalar_lea.hbm %s5885_s4, 16 }
  0x27   : > { %p4843_p9 = scmp.ne.s32.totalorder %s5885_s4, %s4842_s25  ;;  %p4849_p5 = scmp.lt.u32.totalorder %s4842_s25, %s5885_s4 }
  0x29   : > { %p4845_p1 = pnand %p4843_p9, %p4816_p10 }
  0x2b   : > { %p4846_p4 = pneg %p4845_p1 }
  0x2d   : > { %p4851_p6 = pnand %p4849_p5, %p4846_p4 }
  0x2f   : > { %4854 = shalt.err (!%p4851_p6)
}
  0x30   : > { %s4855_s26 = scalar_lea.vmem %s5091_s28, 16  ;;  %s4862_s10 = scalar_lea.vmem %s5091_s28, 32 }
  0x31   : > { %p4856_p11 = scmp.ne.s32.totalorder %s5091_s28, %s4855_s26  ;;  %p4863_p0 = scmp.lt.s32.totalorder %s5091_s28, %s5091_s28 }
  0x32   : > { %p4864_p2 = scmp.lt.s32.totalorder %s4862_s10, %s4855_s26 }
  0x33   : > { %p4858_p12 = pnand %p4856_p11, %p4816_p10 }
  0x34   : > { %p4865_p3 = por %p4864_p2, %p4863_p0 }
  0x35   : > { %p4859_p13 = pneg %p4858_p12 }
  0x37   : > { %p4866_p7 = pnand %p4865_p3, %p4859_p13 }
  0x39   : > { %4869 = shalt.err (!%p4866_p7)
}
  0x3a   : > { %4127 = dma.hbm_to_vmem [thread:$0]  (!%p5087_p8), %s5885_s4, 16, %s5091_s28, [#allocation10]  }
  0x3b   : > { %p28_p10 = scmp.eq.s32.totalorder %s27_s6, 0  ;;  %s30_s13 = sadd.s32 1, %s5002_s20 }
  0x3c   : > { %p37_p9 = scmp.ne.s32.totalorder %s5002_s20, %s4998_s19  ;;  %p38_p1 = scmp.eq.s32.totalorder %s5006_s21, 0 }
  0x3d   : > { %s5154_s29 = scalar_select %p28_p10, %s5002_s20, %s30_s13  }
  0x3e   : > { %p39_p4 = por %p38_p1, %p37_p9  ;;  %p4137_p5 = scmp.lt.s32.totalorder %s5006_s21, 2 }
  0x3f   : > { %s5158_s14 = sand.u32 1, %s5002_s20   ;;  %s4030_s15 = smul.u32 1600, %s5006_s21 }
  0x40   : > { %s4101_s16 = smul.u32 100, %s5158_s14  ;;  %p5167_p8 = pnand %p4137_p5, %p39_p4 }
  0x41   : > { %s5165_s28 = scalar_lea.hbm %s5881_s0, %s4030_s15  ;;  %s4102_s25 = smul.u32 3200, %s5158_s14 }
  0x42   : > { %s206_s27 = scalar_lea.vmem [#allocation3], %s4101_s16  ;;  %s203_s8 = scalar_lea.sflag [#allocation4], %s5158_s14 }
  0x43   : > { %s214_s7 = sshll.u32 %s206_s27, 4  ;;  %s4870_s9 = scalar_lea.hbm %s5165_s28, 1600  ;;  %s5172_s7 = int_to_ptr.vmem [resolvable:$true] %s214_s7 }
  0x44   : > { %p4871_p6 = scmp.ne.s32.totalorder %s5165_s28, %s4870_s9  ;;  %p4872_p11 = pneg %p5167_p8 }
  0x45   : > { %s4875_s11 = scalar_lea.hbm %s5881_s0, 3200  ;;  %p4876_p0 = scmp.lt.u32.totalorder %s5165_s28, %s5881_s0 }
  0x46   : > { %p4873_p12 = pnand %p4872_p11, %p4871_p6  ;;  %p4877_p2 = scmp.lt.u32.totalorder %s4875_s11, %s4870_s9 }
  0x47   : > { %p4879_p7 = scmp.lt.u32.totalorder %s4870_s9, %s5165_s28 }
  0x48   : > { %p4874_p13 = pneg %p4873_p12  ;;  %p4878_p3 = por %p4877_p2, %p4876_p0 }
  0x4a   : > { %p4880_p10 = por %p4879_p7, %p4878_p3 }
  0x4c   : > { %p4881_p9 = pnand %p4880_p10, %p4874_p13 }
  0x4e   : > { %4884 = shalt.err (!%p4881_p9)
}
  0x4f   : > { %s4885_s15 = scalar_lea.vmem %s5172_s7, 1600  ;;  %s5010_s16 = smov [#allocation3]  }
  0x50   : > { %p4886_p1 = scmp.ne.s32.totalorder %s5172_s7, %s4885_s15  ;;  %s4890_s17 = sshll.u32 %s5010_s16, 4  ;;  %s4891_s17 = int_to_ptr.vmem [resolvable:$false] %s4890_s17 }
  0x51   : > { %s4892_s18 = scalar_lea.vmem %s4891_s17, 3200  ;;  %p4893_p6 = scmp.lt.s32.totalorder %s5172_s7, %s4891_s17 }
  0x52   : > { %p4888_p4 = pnand %p4886_p1, %p4872_p11  ;;  %p4894_p12 = scmp.lt.s32.totalorder %s4892_s18, %s4885_s15 }
  0x54   : > { %p4889_p5 = pneg %p4888_p4  ;;  %p4895_p0 = por %p4894_p12, %p4893_p6 }
  0x56   : > { %p4896_p2 = pnand %p4895_p0, %p4889_p5 }
  0x58   : > { %4899 = shalt.err (!%p4896_p2)
}
  0x59   : > { %4131 = dma.hbm_to_vmem [thread:$0]  (!%p5167_p8), %s5165_s28, 1600, %s5172_s7, %s203_s8  }
  0x5a   : > { %s225_s27 = scalar_lea.vmem [#allocation6], %s4102_s25  ;;  %s221_s26 = sand.u32 1, %s5006_s21  }
  0x5b   : > { %s233_s9 = sshll.u32 %s225_s27, 4  ;;  %s4033_s10 = smul.u32 51200, %s5006_s21  ;;  %s5203_s9 = int_to_ptr.vmem [resolvable:$true] %s233_s9 }
  0x5c   : > { %s5211_s15 = scalar_lea.sflag [#allocation7], %s221_s26  ;;  %s4905_s21 = scalar_lea.hbm %s5882_s1, 102400 }
  0x5d   : > { %s5209_s13 = scalar_lea.hbm %s5882_s1, %s4033_s10 }
  0x5e   : > { %s4900_s16 = scalar_lea.hbm %s5209_s13, 51200  ;;  %p4906_p10 = scmp.lt.u32.totalorder %s5209_s13, %s5882_s1 }
  0x5f   : > { %p4901_p13 = scmp.ne.s32.totalorder %s5209_s13, %s4900_s16  ;;  %p4907_p9 = scmp.lt.u32.totalorder %s4905_s21, %s4900_s16 }
  0x60   : > { %p4909_p4 = scmp.lt.u32.totalorder %s4900_s16, %s5209_s13 }
  0x61   : > { %p4903_p3 = pnand %p4901_p13, %p4872_p11  ;;  %p4908_p1 = por %p4907_p9, %p4906_p10 }
  0x63   : > { %p4904_p7 = pneg %p4903_p3  ;;  %p4910_p5 = por %p4909_p4, %p4908_p1 }
  0x65   : > { %p4911_p6 = pnand %p4910_p5, %p4904_p7 }
  0x67   : > { %4914 = shalt.err (!%p4911_p6)
}
  0x68   : > { %s4915_s8 = scalar_lea.vmem %s5203_s9, 51200  ;;  %s5011_s17 = smov [#allocation6]  }
  0x69   : > { %p4916_p12 = scmp.ne.s32.totalorder %s5203_s9, %s4915_s8  ;;  %s4920_s18 = sshll.u32 %s5011_s17, 4  ;;  %s4921_s18 = int_to_ptr.vmem [resolvable:$false] %s4920_s18 }
  0x6a   : > { %s4922_s27 = scalar_lea.vmem %s4921_s18, 102400  ;;  %p4923_p13 = scmp.lt.s32.totalorder %s5203_s9, %s4921_s18 }
  0x6b   : > { %p4918_p0 = pnand %p4916_p12, %p4872_p11  ;;  %p4924_p3 = scmp.lt.s32.totalorder %s4922_s27, %s4915_s8 }
  0x6d   : > { %p4919_p2 = pneg %p4918_p0  ;;  %p4925_p10 = por %p4924_p3, %p4923_p13 }
  0x6f   : > { %p4926_p9 = pnand %p4925_p10, %p4919_p2 }
  0x71   : > { %4929 = shalt.err (!%p4926_p9)
}
  0x72   : > { %s5012_s26 = smov 128   ;;  %s5013_s10 = smov 8  }
  0x73   : > { %4134 = dma.hbm_to_vmem [thread:$0]  (!%p5167_p8), %s5209_s13, 51200, %s5203_s9, %s5211_s15, %s5012_s26, %s5012_s26, %s5013_s10  }
  0x74   : > { %p5894_p11 = scmp.ne.s32.totalorder %s5891_s24, 0 }
  0x75   : > { %s247_s11 = sand.u32 (!%p5894_p11), 1, %s4998_s19   ;;  %p5895_p7 = scmp.ne.s32.totalorder (!%p5894_p11), %s5890_s23, 0 }
  0x76   : > { %245 = sbr.rel (%p5894_p11) target bundleno = 1359 (0x54f), region = 40  ;;  %s248_s16 = scalar_lea.sflag (!%p5894_p11), [#allocation4], %s247_s11 }
  0x77   : > { %s4103_s12 = smul.u32 (!%p5894_p11), 100, %s247_s11 }
  0x79   : > { %s5240_s14 = scalar_lea.vmem (!%p5894_p11), [#allocation3], %s4103_s12 }
  0x7d   : > { %4973 = dma.done.wait (%p5895_p7), %s248_s16, 1600  }
  0x7e   : > { %4975 = vsyncadd (%p5895_p7), %s248_s16, 4294965696  ;;  %s256_s28 = sand.u32 1, %s5066_s22   ;;  %s4104_s6 = smul.u32 3200, %s247_s11 }
  0x7f   : > { %s257_s9 = scalar_lea.sflag [#allocation7], %s256_s28 }
  0x80   : > { %s5247_s13 = scalar_lea.vmem [#allocation6], %s4104_s6 }
  0x81   : > { %4977 = dma.done.wait (%p5895_p7), %s257_s9, 51200  }
  0x82   : > { %4979 = vsyncadd (%p5895_p7), %s257_s9, 4294916096  ;;  %p5896_p8 = scmp.eq.s32.totalorder %s5066_s22, 0 }
  0x84   : > { %4981 = dma.done.wait (%p5896_p8), [#allocation7], 32   ;;  %p5897_p1 = pmov %p5896_p8 }
  0x86   : > { %4983 = vsyncadd (%p5897_p1), [#allocation7], 4294967264  ;;  %p5898_p4 = pmov %p5897_p1 }
  0x87   : > { %p5899_p5 = pmov %p5897_p1 }
  0x88   : > { %4985 = dma.done.wait (%p5898_p4), [#allocation10], 16  }
  0x89   : > { %4987 = vsyncadd (%p5899_p5), [#allocation10], 4294967280  ;;  %p5900_p6 = scmp.ne.s32.totalorder %s5066_s22, 0 }
  0x8a   : > { %v5014_v0 = vmov (!%p5900_p6), 0.0  }
  0x8b   : > { %301 = sbr.rel (%p5900_p6) target bundleno = 146 (0x92), region = 60  ;;  %302 = vst [vmem:[#allocation2] sm:$0xff] (!%p5900_p6), %v5014_v0  ;;  %303 = vst [vmem:[#allocation2 + $0x8] sm:$0xff] (!%p5900_p6), %v5014_v0 }
  0x92 PF: > { %v4181_v1 = vld [vmem:[%s5247_s13 + $0x4] ss:$8 sps:$4 sm:$0xff]   ;;  %v4185_v3 = vld [vmem:[%s5247_s13] ss:$8 sps:$4 sm:$0xff]   ;;  %v4187_v5 = vld [vmem:[%s5247_s13 + $0x14] ss:$8 sps:$4 sm:$0xff]  }
  0x93   : > { %v4183_v2 = vld [vmem:[%s5247_s13 + $0x104] ss:$8 sps:$4 sm:$0xff]   ;;  %2807 = vmatprep.subr.bf16.mxu0 %v4181_v1  ;;  %v4186_v4 = vld [vmem:[%s5247_s13 + $0x100] ss:$8 sps:$4 sm:$0xff]   ;;  %v4189_v6 = vld [vmem:[%s5247_s13 + $0x114] ss:$8 sps:$4 sm:$0xff]  }
  0x94   : > { %2848 = vmatprep.subr.bf16.mxu1 %v4183_v2  ;;  %2808 = vmatpush1.bf16.msra.mxu0 %v4185_v3  ;;  %v4191_v7 = vld [vmem:[%s5247_s13 + $0x10] ss:$8 sps:$4 sm:$0xff]   ;;  %v4193_v9 = vld [vmem:[%s5247_s13 + $0x24] ss:$8 sps:$4 sm:$0xff]   ;;  %v4197_v11 = vld [vmem:[%s5247_s13 + $0x20] ss:$8 sps:$4 sm:$0xff]  }
  0x95   : > { %2849 = vmatpush1.bf16.msra.mxu1 %v4186_v4  ;;  %2809 = vmatprep.subr.bf16.mxu0 %v4187_v5  ;;  %v4192_v8 = vld [vmem:[%s5247_s13 + $0x110] ss:$8 sps:$4 sm:$0xff]   ;;  %v4195_v10 = vld [vmem:[%s5247_s13 + $0x124] ss:$8 sps:$4 sm:$0xff]   ;;  %v4198_v12 = vld [vmem:[%s5247_s13 + $0x120] ss:$8 sps:$4 sm:$0xff]  }
  0x96   : > { %2850 = vmatprep.subr.bf16.mxu1 %v4189_v6  ;;  %v4199_v13 = vld [vmem:[%s5247_s13 + $0x34] ss:$8 sps:$4 sm:$0xff]   ;;  %v4203_v15 = vld [vmem:[%s5247_s13 + $0x30] ss:$8 sps:$4 sm:$0xff]   ;;  %v4205_v17 = vld [vmem:[%s5247_s13 + $0x44] ss:$8 sps:$4 sm:$0xff]  }
  0x97   : > { %v4201_v14 = vld [vmem:[%s5247_s13 + $0x134] ss:$8 sps:$4 sm:$0xff]   ;;  %v4204_v16 = vld [vmem:[%s5247_s13 + $0x130] ss:$8 sps:$4 sm:$0xff]   ;;  %v4207_v18 = vld [vmem:[%s5247_s13 + $0x144] ss:$8 sps:$4 sm:$0xff]  }
  0x98   : > { %2810 = vmatpush1.bf16.msra.mxu0 %v4191_v7  ;;  %v4209_v19 = vld [vmem:[%s5247_s13 + $0x40] ss:$8 sps:$4 sm:$0xff]   ;;  %v4211_v21 = vld [vmem:[%s5247_s13 + $0x54] ss:$8 sps:$4 sm:$0xff]   ;;  %v4215_v23 = vld [vmem:[%s5247_s13 + $0x50] ss:$8 sps:$4 sm:$0xff]  }
  0x99   : > { %2851 = vmatpush1.bf16.msra.mxu1 %v4192_v8  ;;  %2811 = vmatprep.subr.bf16.mxu0 %v4193_v9  ;;  %v4210_v20 = vld [vmem:[%s5247_s13 + $0x140] ss:$8 sps:$4 sm:$0xff]   ;;  %v4213_v22 = vld [vmem:[%s5247_s13 + $0x154] ss:$8 sps:$4 sm:$0xff]   ;;  %v4216_v24 = vld [vmem:[%s5247_s13 + $0x150] ss:$8 sps:$4 sm:$0xff]  }
  0x9a   : > { %2852 = vmatprep.subr.bf16.mxu1 %v4195_v10  ;;  %v4217_v25 = vld [vmem:[%s5247_s13 + $0x64] ss:$8 sps:$4 sm:$0xff]   ;;  %v4221_v27 = vld [vmem:[%s5247_s13 + $0x60] ss:$8 sps:$4 sm:$0xff]   ;;  %v4223_v29 = vld [vmem:[%s5247_s13 + $0x74] ss:$8 sps:$4 sm:$0xff]  }
  0x9b   : > { %v4219_v26 = vld [vmem:[%s5247_s13 + $0x164] ss:$8 sps:$4 sm:$0xff]   ;;  %v4222_v28 = vld [vmem:[%s5247_s13 + $0x160] ss:$8 sps:$4 sm:$0xff]   ;;  %v4225_v30 = vld [vmem:[%s5247_s13 + $0x174] ss:$8 sps:$4 sm:$0xff]  }
  0x9c   : > { %2812 = vmatpush1.bf16.msra.mxu0 %v4197_v11  ;;  %v4227_v31 = vld [vmem:[%s5247_s13 + $0x70] ss:$8 sps:$4 sm:$0xff]   ;;  %v4229_v33 = vld [vmem:[%s5247_s13 + $0x84] ss:$8 sps:$4 sm:$0xff]   ;;  %v4233_v35 = vld [vmem:[%s5247_s13 + $0x80] ss:$8 sps:$4 sm:$0xff]  }
  0x9d   : > { %2853 = vmatpush1.bf16.msra.mxu1 %v4198_v12  ;;  %2813 = vmatprep.subr.bf16.mxu0 %v4199_v13  ;;  %v4228_v32 = vld [vmem:[%s5247_s13 + $0x170] ss:$8 sps:$4 sm:$0xff]   ;;  %v4231_v34 = vld [vmem:[%s5247_s13 + $0x184] ss:$8 sps:$4 sm:$0xff]   ;;  %v4234_v36 = vld [vmem:[%s5247_s13 + $0x180] ss:$8 sps:$4 sm:$0xff]  }
  0x9e   : > { %2854 = vmatprep.subr.bf16.mxu1 %v4201_v14  ;;  %v4235_v37 = vld [vmem:[%s5247_s13 + $0x94] ss:$8 sps:$4 sm:$0xff]   ;;  %v4239_v39 = vld [vmem:[%s5247_s13 + $0x90] ss:$8 sps:$4 sm:$0xff]   ;;  %v4241_v41 = vld [vmem:[%s5247_s13 + $0xa4] ss:$8 sps:$4 sm:$0xff]  }
  0x9f   : > { %v4237_v38 = vld [vmem:[%s5247_s13 + $0x194] ss:$8 sps:$4 sm:$0xff]   ;;  %v4240_v40 = vld [vmem:[%s5247_s13 + $0x190] ss:$8 sps:$4 sm:$0xff]   ;;  %v4243_v42 = vld [vmem:[%s5247_s13 + $0x1a4] ss:$8 sps:$4 sm:$0xff]  }
  0xa0   : > { %2814 = vmatpush1.bf16.msra.mxu0 %v4203_v15  ;;  %v4245_v43 = vld [vmem:[%s5247_s13 + $0xa0] ss:$8 sps:$4 sm:$0xff]   ;;  %v4247_v45 = vld [vmem:[%s5247_s13 + $0xb4] ss:$8 sps:$4 sm:$0xff]   ;;  %v4251_v50 = vld [vmem:[%s5247_s13 + $0xb0] ss:$8 sps:$4 sm:$0xff]  }
  0xa1   : > { %2855 = vmatpush1.bf16.msra.mxu1 %v4204_v16  ;;  %2815 = vmatprep.subr.bf16.mxu0 %v4205_v17  ;;  %v4246_v44 = vld [vmem:[%s5247_s13 + $0x1a0] ss:$8 sps:$4 sm:$0xff]   ;;  %v4249_v46 = vld [vmem:[%s5247_s13 + $0x1b4] ss:$8 sps:$4 sm:$0xff]   ;;  %v4252_v51 = vld [vmem:[%s5247_s13 + $0x1b0] ss:$8 sps:$4 sm:$0xff]  }
  0xa2   : > { %2856 = vmatprep.subr.bf16.mxu1 %v4207_v18  ;;  %v306_v47 = vld [vmem:[%s5240_s14] sm:$0xff]  ;;  %v307_v49 = vld [vmem:[%s5240_s14 + $0x8] sm:$0xff]  ;;  %p4024_p12 = scmp.ne.s32.totalorder %s5066_s22, 1 }
  0xa3   : > { %v3600_v48 = vcombine.high %v306_v47, %v306_v47  ;;  %v3602_v52 = vcombine.high %v307_v49, %v307_v49  ;;  %v4253_v53 = vld [vmem:[%s5247_s13 + $0xc4] ss:$8 sps:$4 sm:$0xff]   ;;  %v4257_v55 = vld [vmem:[%s5247_s13 + $0xc0] ss:$8 sps:$4 sm:$0xff]   ;;  %v4259_v57 = vld [vmem:[%s5247_s13 + $0xd4] ss:$8 sps:$4 sm:$0xff]   ;;  %v3599_v7 = vcombine.low %v306_v47, %v306_v47  ;;  %v3601_v8 = vcombine.low %v307_v49, %v307_v49 }
  0xa4   : > { %2816 = vmatpush1.bf16.msra.mxu0 %v4209_v19  ;;  %v4255_v54 = vld [vmem:[%s5247_s13 + $0x1c4] ss:$8 sps:$4 sm:$0xff]   ;;  %v4258_v56 = vld [vmem:[%s5247_s13 + $0x1c0] ss:$8 sps:$4 sm:$0xff]   ;;  %v4261_v58 = vld [vmem:[%s5247_s13 + $0x1d4] ss:$8 sps:$4 sm:$0xff]  }
  0xa5   : > { %2857 = vmatpush1.bf16.msra.mxu1 %v4210_v20  ;;  %2817 = vmatprep.subr.bf16.mxu0 %v4211_v21  ;;  %v4263_v59 = vld [vmem:[%s5247_s13 + $0xd0] ss:$8 sps:$4 sm:$0xff]   ;;  %v4265_v61 = vld [vmem:[%s5247_s13 + $0xe4] ss:$8 sps:$4 sm:$0xff]   ;;  %v4269_v63 = vld [vmem:[%s5247_s13 + $0xe0] ss:$8 sps:$4 sm:$0xff]  }
  0xa6   : > { %2858 = vmatprep.subr.bf16.mxu1 %v4213_v22  ;;  %2839 = vmatprep.mubr.bf16.mxu0 %v3600_v48  ;;  %v4264_v60 = vld [vmem:[%s5247_s13 + $0x1d0] ss:$8 sps:$4 sm:$0xff]   ;;  %v4267_v62 = vld [vmem:[%s5247_s13 + $0x1e4] ss:$8 sps:$4 sm:$0xff]   ;;  %v4270_v0 = vld [vmem:[%s5247_s13 + $0x1e0] ss:$8 sps:$4 sm:$0xff]  }
  0xa7   : > { %2880 = vmatprep.mubr.bf16.mxu1 %v3602_v52  ;;  %v4271_v1 = vld [vmem:[%s5247_s13 + $0xf4] ss:$8 sps:$4 sm:$0xff]   ;;  %v4275_v3 = vld [vmem:[%s5247_s13 + $0xf0] ss:$8 sps:$4 sm:$0xff]   ;;  %v4283_v5 = vld [vmem:[%s5247_s13 + $0x204] ss:$8 sps:$4 sm:$0xff]  }
  0xa8   : > { %2818 = vmatpush1.bf16.msra.mxu0 %v4215_v23  ;;  %v4273_v2 = vld [vmem:[%s5247_s13 + $0x1f4] ss:$8 sps:$4 sm:$0xff]   ;;  %v4276_v4 = vld [vmem:[%s5247_s13 + $0x1f0] ss:$8 sps:$4 sm:$0xff]   ;;  %v4286_v6 = vld [vmem:[%s5247_s13 + $0x304] ss:$8 sps:$4 sm:$0xff]  }
  0xa9   : > { %2859 = vmatpush1.bf16.msra.mxu1 %v4216_v24  ;;  %2819 = vmatprep.subr.bf16.mxu0 %v4217_v25  ;;  %v4281_v9 = vld [vmem:[%s5247_s13 + $0x200] ss:$8 sps:$4 sm:$0xff]   ;;  %v4289_v11 = vld [vmem:[%s5247_s13 + $0x214] ss:$8 sps:$4 sm:$0xff]   ;;  %v4287_v13 = vld [vmem:[%s5247_s13 + $0x210] ss:$8 sps:$4 sm:$0xff]  }
  0xaa   : > { %2860 = vmatprep.subr.bf16.mxu1 %v4219_v26  ;;  %v4284_v10 = vld [vmem:[%s5247_s13 + $0x300] ss:$8 sps:$4 sm:$0xff]   ;;  %v4292_v12 = vld [vmem:[%s5247_s13 + $0x314] ss:$8 sps:$4 sm:$0xff]   ;;  %v4290_v14 = vld [vmem:[%s5247_s13 + $0x310] ss:$8 sps:$4 sm:$0xff]  }
  0xab   : > { %v4295_v15 = vld [vmem:[%s5247_s13 + $0x224] ss:$8 sps:$4 sm:$0xff]   ;;  %v4293_v17 = vld [vmem:[%s5247_s13 + $0x220] ss:$8 sps:$4 sm:$0xff]   ;;  %v4301_v19 = vld [vmem:[%s5247_s13 + $0x234] ss:$8 sps:$4 sm:$0xff]  }
  0xac   : > { %2820 = vmatpush1.bf16.msra.mxu0 %v4221_v27  ;;  %v4298_v16 = vld [vmem:[%s5247_s13 + $0x324] ss:$8 sps:$4 sm:$0xff]   ;;  %v4296_v18 = vld [vmem:[%s5247_s13 + $0x320] ss:$8 sps:$4 sm:$0xff]   ;;  %v4304_v20 = vld [vmem:[%s5247_s13 + $0x334] ss:$8 sps:$4 sm:$0xff]  }
  0xad   : > { %2861 = vmatpush1.bf16.msra.mxu1 %v4222_v28  ;;  %2821 = vmatprep.subr.bf16.mxu0 %v4223_v29  ;;  %v4299_v21 = vld [vmem:[%s5247_s13 + $0x230] ss:$8 sps:$4 sm:$0xff]   ;;  %v4307_v23 = vld [vmem:[%s5247_s13 + $0x244] ss:$8 sps:$4 sm:$0xff]   ;;  %v4305_v25 = vld [vmem:[%s5247_s13 + $0x240] ss:$8 sps:$4 sm:$0xff]  }
  0xae   : > { %2862 = vmatprep.subr.bf16.mxu1 %v4225_v30  ;;  %v4302_v22 = vld [vmem:[%s5247_s13 + $0x330] ss:$8 sps:$4 sm:$0xff]   ;;  %v4310_v24 = vld [vmem:[%s5247_s13 + $0x344] ss:$8 sps:$4 sm:$0xff]   ;;  %v4308_v26 = vld [vmem:[%s5247_s13 + $0x340] ss:$8 sps:$4 sm:$0xff]  }
  0xaf   : > { %v4313_v27 = vld [vmem:[%s5247_s13 + $0x254] ss:$8 sps:$4 sm:$0xff]   ;;  %v4311_v29 = vld [vmem:[%s5247_s13 + $0x250] ss:$8 sps:$4 sm:$0xff]   ;;  %v4346_v52 = vld [vmem:[%s5247_s13 + $0x3a4] ss:$8 sps:$4 sm:$0xff]  }
  0xb0   : > { %2822 = vmatpush1.bf16.msra.mxu0 %v4227_v31  ;;  %v4316_v28 = vld [vmem:[%s5247_s13 + $0x354] ss:$8 sps:$4 sm:$0xff]   ;;  %v4314_v30 = vld [vmem:[%s5247_s13 + $0x350] ss:$8 sps:$4 sm:$0xff]   ;;  %v4319_v31 = vld [vmem:[%s5247_s13 + $0x264] ss:$8 sps:$4 sm:$0xff]  }
  0xb1   : > { %2863 = vmatpush1.bf16.msra.mxu1 %v4228_v32  ;;  %2823 = vmatprep.subr.bf16.mxu0 %v4229_v33  ;;  %v4322_v32 = vld [vmem:[%s5247_s13 + $0x364] ss:$8 sps:$4 sm:$0xff]   ;;  %v4337_v47 = vld [vmem:[%s5247_s13 + $0x294] ss:$8 sps:$4 sm:$0xff]   ;;  %v4335_v49 = vld [vmem:[%s5247_s13 + $0x290] ss:$8 sps:$4 sm:$0xff]  }
  0xb2   : > { %2864 = vmatprep.subr.bf16.mxu1 %v4231_v34  ;;  %v5356_v33 = vld [vmem:[%s5240_s14 + $0x10] sm:$0xff]  ;;  %v4340_v48 = vld [vmem:[%s5247_s13 + $0x394] ss:$8 sps:$4 sm:$0xff]   ;;  %vm3475_vm0 = vcmask (!%p4024_p12), 48128  }
  0xb3   : > { %v4317_v34 = vld [vmem:[%s5247_s13 + $0x260] ss:$8 sps:$4 sm:$0xff]  }
  0xb4   : > { %2824 = vmatpush1.bf16.msra.mxu0 %v4233_v35  ;;  %v4320_v35 = vld [vmem:[%s5247_s13 + $0x360] ss:$8 sps:$4 sm:$0xff]  }
  0xb5   : > { %2865 = vmatpush1.bf16.msra.mxu1 %v4234_v36  ;;  %2825 = vmatprep.subr.bf16.mxu0 %v4235_v37  ;;  %v3604_v36 = vcombine.high %v5356_v33, %v5356_v33  ;;  %v5363_v37 = vld [vmem:[%s5240_s14 + $0x18] sm:$0xff] }
  0xb6   : > { %2866 = vmatprep.subr.bf16.mxu1 %v4237_v38  ;;  %v4325_v38 = vld [vmem:[%s5247_s13 + $0x274] ss:$8 sps:$4 sm:$0xff]  }
  0xb8   : > { %2826 = vmatpush1.bf16.msra.mxu0 %v4239_v39  ;;  %v3606_v39 = vcombine.high %v5363_v37, %v5363_v37 }
  0xb9   : > { %2867 = vmatpush1.bf16.msra.mxu1 %v4240_v40  ;;  %2827 = vmatprep.subr.bf16.mxu0 %v4241_v41  ;;  %v4328_v40 = vld [vmem:[%s5247_s13 + $0x374] ss:$8 sps:$4 sm:$0xff]   ;;  %v4323_v41 = vld [vmem:[%s5247_s13 + $0x270] ss:$8 sps:$4 sm:$0xff]  }
  0xba   : > { %2868 = vmatprep.subr.bf16.mxu1 %v4243_v42  ;;  %v4326_v42 = vld [vmem:[%s5247_s13 + $0x370] ss:$8 sps:$4 sm:$0xff]  }
  0xbc   : > { %2828 = vmatpush1.bf16.msra.mxu0 %v4245_v43  ;;  %v4331_v43 = vld [vmem:[%s5247_s13 + $0x284] ss:$8 sps:$4 sm:$0xff]  }
  0xbd   : > { %2869 = vmatpush1.bf16.msra.mxu1 %v4246_v44  ;;  %2829 = vmatprep.subr.bf16.mxu0 %v4247_v45  ;;  %v4334_v44 = vld [vmem:[%s5247_s13 + $0x384] ss:$8 sps:$4 sm:$0xff]   ;;  %v4329_v45 = vld [vmem:[%s5247_s13 + $0x280] ss:$8 sps:$4 sm:$0xff]  }
  0xbe   : > { %2870 = vmatprep.subr.bf16.mxu1 %v4249_v46  ;;  %v4332_v46 = vld [vmem:[%s5247_s13 + $0x380] ss:$8 sps:$4 sm:$0xff]  }
  0xc0   : > { %2830 = vmatpush1.bf16.msra.mxu0 %v4251_v50  ;;  %v4338_v50 = vld [vmem:[%s5247_s13 + $0x390] ss:$8 sps:$4 sm:$0xff]  }
  0xc1   : > { %2871 = vmatpush1.bf16.msra.mxu1 %v4252_v51  ;;  %2831 = vmatprep.subr.bf16.mxu0 %v4253_v53  ;;  %v4343_v51 = vld [vmem:[%s5247_s13 + $0x2a4] ss:$8 sps:$4 sm:$0xff]   ;;  %v4341_v53 = vld [vmem:[%s5247_s13 + $0x2a0] ss:$8 sps:$4 sm:$0xff]  }
  0xc2   : > { %2872 = vmatprep.subr.bf16.mxu1 %v4255_v54  ;;  %v4344_v54 = vld [vmem:[%s5247_s13 + $0x3a0] ss:$8 sps:$4 sm:$0xff]  }
  0xc4   : > { %2832 = vmatpush1.bf16.msra.mxu0 %v4257_v55  ;;  %v4349_v55 = vld [vmem:[%s5247_s13 + $0x2b4] ss:$8 sps:$4 sm:$0xff]  }
  0xc5   : > { %2873 = vmatpush1.bf16.msra.mxu1 %v4258_v56  ;;  %2833 = vmatprep.subr.bf16.mxu0 %v4259_v57  ;;  %v4352_v56 = vld [vmem:[%s5247_s13 + $0x3b4] ss:$8 sps:$4 sm:$0xff]   ;;  %v4347_v57 = vld [vmem:[%s5247_s13 + $0x2b0] ss:$8 sps:$4 sm:$0xff]  }
  0xc6   : > { %2874 = vmatprep.subr.bf16.mxu1 %v4261_v58  ;;  %v4350_v58 = vld [vmem:[%s5247_s13 + $0x3b0] ss:$8 sps:$4 sm:$0xff]  }
  0xc8   : > { %2834 = vmatpush1.bf16.msra.mxu0 %v4263_v59  ;;  %v4355_v59 = vld [vmem:[%s5247_s13 + $0x2c4] ss:$8 sps:$4 sm:$0xff]  }
  0xc9   : > { %2875 = vmatpush1.bf16.msra.mxu1 %v4264_v60  ;;  %2835 = vmatprep.subr.bf16.mxu0 %v4265_v61  ;;  %v4358_v60 = vld [vmem:[%s5247_s13 + $0x3c4] ss:$8 sps:$4 sm:$0xff]   ;;  %v4353_v61 = vld [vmem:[%s5247_s13 + $0x2c0] ss:$8 sps:$4 sm:$0xff]  }
  0xca   : > { %2876 = vmatprep.subr.bf16.mxu1 %v4267_v62  ;;  %v4356_v62 = vld [vmem:[%s5247_s13 + $0x3c0] ss:$8 sps:$4 sm:$0xff]  }
  0xcc   : > { %2836 = vmatpush1.bf16.msra.mxu0 %v4269_v63  ;;  %v4361_v63 = vld [vmem:[%s5247_s13 + $0x2d4] ss:$8 sps:$4 sm:$0xff]  }
  0xcd   : > { %2877 = vmatpush1.bf16.msra.mxu1 %v4270_v0  ;;  %2837 = vmatprep.subr.bf16.mxu0 %v4271_v1  ;;  %v4364_v0 = vld [vmem:[%s5247_s13 + $0x3d4] ss:$8 sps:$4 sm:$0xff]   ;;  %v4359_v1 = vld [vmem:[%s5247_s13 + $0x2d0] ss:$8 sps:$4 sm:$0xff]  }
  0xce   : > { %2878 = vmatprep.subr.bf16.mxu1 %v4273_v2  ;;  %v4362_v2 = vld [vmem:[%s5247_s13 + $0x3d0] ss:$8 sps:$4 sm:$0xff]  }
  0xd0   : > { %2838 = vmatpush1.bf16.msra.mxu0 %v4275_v3  ;;  %v4367_v3 = vld [vmem:[%s5247_s13 + $0x2e4] ss:$8 sps:$4 sm:$0xff]  }
  0xd1   : > { %2879 = vmatpush1.bf16.msra.mxu1 %v4276_v4  ;;  %2889 = vmatprep.subr.bf16.mxu0 %v4283_v5  ;;  %v4370_v4 = vld [vmem:[%s5247_s13 + $0x3e4] ss:$8 sps:$4 sm:$0xff]   ;;  %v4365_v5 = vld [vmem:[%s5247_s13 + $0x2e0] ss:$8 sps:$4 sm:$0xff]  }
  0xd2   : > { %2930 = vmatprep.subr.bf16.mxu1 %v4286_v6  ;;  %v4368_v6 = vld [vmem:[%s5247_s13 + $0x3e0] ss:$8 sps:$4 sm:$0xff]  }
  0xd3   : > { %2840 = vmatmul.mubr.bf16.vlgmr.msra.gmra.mrb[0].mxu0 %v3599_v7  ;;  %v4373_v7 = vld [vmem:[%s5247_s13 + $0x2f4] ss:$8 sps:$4 sm:$0xff]  }
  0xd4   : > { %2881 = vmatmul.mubr.bf16.vlgmr.msra.gmra.mrb[0].mxu1 %v3601_v8  ;;  %2890 = vmatpush1.bf16.msra.mxu0 %v4281_v9  ;;  %v4376_v8 = vld [vmem:[%s5247_s13 + $0x3f4] ss:$8 sps:$4 sm:$0xff]   ;;  %v4371_v9 = vld [vmem:[%s5247_s13 + $0x2f0] ss:$8 sps:$4 sm:$0xff]  }
  0xd5   : > { %2931 = vmatpush1.bf16.msra.mxu1 %v4284_v10  ;;  %2891 = vmatprep.subr.bf16.mxu0 %v4289_v11  ;;  %v4374_v10 = vld [vmem:[%s5247_s13 + $0x3f0] ss:$8 sps:$4 sm:$0xff]   ;;  %v4381_v11 = vld [vmem:[%s5247_s13 + $0x404] ss:$8 sps:$4 sm:$0xff]  }
  0xd6   : > { %2932 = vmatprep.subr.bf16.mxu1 %v4292_v12  ;;  %2921 = vmatprep.mubr.bf16.mxu0 %v3604_v36  ;;  %v4386_v12 = vld [vmem:[%s5247_s13 + $0x504] ss:$8 sps:$4 sm:$0xff]   ;;  %v4408_v36 = vld [vmem:[%s5247_s13 + $0x540] ss:$8 sps:$4 sm:$0xff]  }
  0xd7   : > { %2962 = vmatprep.mubr.bf16.mxu1 %v3606_v39  ;;  %v4411_v39 = vld [vmem:[%s5247_s13 + $0x450] ss:$8 sps:$4 sm:$0xff]  }
  0xd8   : > { %2892 = vmatpush1.bf16.msra.mxu0 %v4287_v13  ;;  %v3603_v13 = vcombine.low %v5356_v33, %v5356_v33  ;;  %v4407_v33 = vld [vmem:[%s5247_s13 + $0x444] ss:$8 sps:$4 sm:$0xff]  }
  0xd9   : > { %2933 = vmatpush1.bf16.msra.mxu1 %v4290_v14  ;;  %2893 = vmatprep.subr.bf16.mxu0 %v4295_v15  ;;  %v4379_v14 = vld [vmem:[%s5247_s13 + $0x400] ss:$8 sps:$4 sm:$0xff]   ;;  %v3605_v15 = vcombine.low %v5363_v37, %v5363_v37  ;;  %v4413_v37 = vld [vmem:[%s5247_s13 + $0x454] ss:$8 sps:$4 sm:$0xff]  }
  0xda   : > { %2934 = vmatprep.subr.bf16.mxu1 %v4298_v16  ;;  %v4384_v16 = vld [vmem:[%s5247_s13 + $0x500] ss:$8 sps:$4 sm:$0xff]  }
  0xdc   : > { %2894 = vmatpush1.bf16.msra.mxu0 %v4293_v17  ;;  %v4389_v17 = vld [vmem:[%s5247_s13 + $0x414] ss:$8 sps:$4 sm:$0xff]  }
  0xdd   : > { %2935 = vmatpush1.bf16.msra.mxu1 %v4296_v18  ;;  %2895 = vmatprep.subr.bf16.mxu0 %v4301_v19  ;;  %v4392_v18 = vld [vmem:[%s5247_s13 + $0x514] ss:$8 sps:$4 sm:$0xff]  }
  0xde   : > { %2936 = vmatprep.subr.bf16.mxu1 %v4304_v20  ;;  %v5414_v19 = vld [vmem:[%s5240_s14 + $0x20] sm:$0xff] }
  0xdf   : > { %v3608_v20 = vcombine.high %v5414_v19, %v5414_v19 }
  0xe0   : > { %2896 = vmatpush1.bf16.msra.mxu0 %v4299_v21  ;;  %v5419_v21 = vld [vmem:[%s5240_s14 + $0x28] sm:$0xff] }
  0xe1   : > { %2937 = vmatpush1.bf16.msra.mxu1 %v4302_v22  ;;  %2897 = vmatprep.subr.bf16.mxu0 %v4307_v23  ;;  %v4387_v22 = vld [vmem:[%s5247_s13 + $0x410] ss:$8 sps:$4 sm:$0xff]  }
  0xe2   : > { %2938 = vmatprep.subr.bf16.mxu1 %v4310_v24  ;;  %v4390_v23 = vld [vmem:[%s5247_s13 + $0x510] ss:$8 sps:$4 sm:$0xff]   ;;  %v3610_v24 = vcombine.high %v5419_v21, %v5419_v21 }
  0xe4   : > { %2898 = vmatpush1.bf16.msra.mxu0 %v4305_v25  ;;  %v4395_v25 = vld [vmem:[%s5247_s13 + $0x424] ss:$8 sps:$4 sm:$0xff]  }
  0xe5   : > { %2939 = vmatpush1.bf16.msra.mxu1 %v4308_v26  ;;  %2899 = vmatprep.subr.bf16.mxu0 %v4313_v27  ;;  %v4398_v26 = vld [vmem:[%s5247_s13 + $0x524] ss:$8 sps:$4 sm:$0xff]   ;;  %v4393_v27 = vld [vmem:[%s5247_s13 + $0x420] ss:$8 sps:$4 sm:$0xff]  }
  0xe6   : > { %2940 = vmatprep.subr.bf16.mxu1 %v4316_v28  ;;  %v4396_v28 = vld [vmem:[%s5247_s13 + $0x520] ss:$8 sps:$4 sm:$0xff]  }
  0xe8   : > { %2900 = vmatpush1.bf16.msra.mxu0 %v4311_v29  ;;  %v4401_v29 = vld [vmem:[%s5247_s13 + $0x434] ss:$8 sps:$4 sm:$0xff]  }
  0xe9   : > { %2941 = vmatpush1.bf16.msra.mxu1 %v4314_v30  ;;  %2901 = vmatprep.subr.bf16.mxu0 %v4319_v31  ;;  %v4404_v30 = vld [vmem:[%s5247_s13 + $0x534] ss:$8 sps:$4 sm:$0xff]   ;;  %v4399_v31 = vld [vmem:[%s5247_s13 + $0x430] ss:$8 sps:$4 sm:$0xff]  }
  0xea   : > { %2942 = vmatprep.subr.bf16.mxu1 %v4322_v32  ;;  %v4402_v32 = vld [vmem:[%s5247_s13 + $0x530] ss:$8 sps:$4 sm:$0xff]  }
  0xec   : > { %2902 = vmatpush1.bf16.msra.mxu0 %v4317_v34  ;;  %v4410_v34 = vld [vmem:[%s5247_s13 + $0x544] ss:$8 sps:$4 sm:$0xff]  }
  0xed   : > { %2943 = vmatpush1.bf16.msra.mxu1 %v4320_v35  ;;  %2903 = vmatprep.subr.bf16.mxu0 %v4325_v38  ;;  %v4405_v35 = vld [vmem:[%s5247_s13 + $0x440] ss:$8 sps:$4 sm:$0xff]   ;;  %v4416_v38 = vld [vmem:[%s5247_s13 + $0x554] ss:$8 sps:$4 sm:$0xff]  }
  0xee   : > { %2944 = vmatprep.subr.bf16.mxu1 %v4328_v40  ;;  %v4414_v40 = vld [vmem:[%s5247_s13 + $0x550] ss:$8 sps:$4 sm:$0xff]  }
  0xf0   : > { %2904 = vmatpush1.bf16.msra.mxu0 %v4323_v41  ;;  %v4419_v41 = vld [vmem:[%s5247_s13 + $0x464] ss:$8 sps:$4 sm:$0xff]  }
  0xf1   : > { %2945 = vmatpush1.bf16.msra.mxu1 %v4326_v42  ;;  %2905 = vmatprep.subr.bf16.mxu0 %v4331_v43  ;;  %v4422_v42 = vld [vmem:[%s5247_s13 + $0x564] ss:$8 sps:$4 sm:$0xff]   ;;  %v4417_v43 = vld [vmem:[%s5247_s13 + $0x460] ss:$8 sps:$4 sm:$0xff]  }
  0xf2   : > { %2946 = vmatprep.subr.bf16.mxu1 %v4334_v44  ;;  %v4420_v44 = vld [vmem:[%s5247_s13 + $0x560] ss:$8 sps:$4 sm:$0xff]  }
  0xf4   : > { %2906 = vmatpush1.bf16.msra.mxu0 %v4329_v45  ;;  %v4425_v45 = vld [vmem:[%s5247_s13 + $0x474] ss:$8 sps:$4 sm:$0xff]  }
  0xf5   : > { %2947 = vmatpush1.bf16.msra.mxu1 %v4332_v46  ;;  %2907 = vmatprep.subr.bf16.mxu0 %v4337_v47  ;;  %v4428_v46 = vld [vmem:[%s5247_s13 + $0x574] ss:$8 sps:$4 sm:$0xff]   ;;  %v4423_v47 = vld [vmem:[%s5247_s13 + $0x470] ss:$8 sps:$4 sm:$0xff]  }
  0xf6   : > { %2948 = vmatprep.subr.bf16.mxu1 %v4340_v48  ;;  %v4426_v48 = vld [vmem:[%s5247_s13 + $0x570] ss:$8 sps:$4 sm:$0xff]  }
  0xf8   : > { %2908 = vmatpush1.bf16.msra.mxu0 %v4335_v49  ;;  %v4431_v49 = vld [vmem:[%s5247_s13 + $0x484] ss:$8 sps:$4 sm:$0xff]  }
  0xf9   : > { %2949 = vmatpush1.bf16.msra.mxu1 %v4338_v50  ;;  %2909 = vmatprep.subr.bf16.mxu0 %v4343_v51  ;;  %v4434_v50 = vld [vmem:[%s5247_s13 + $0x584] ss:$8 sps:$4 sm:$0xff]   ;;  %v4429_v51 = vld [vmem:[%s5247_s13 + $0x480] ss:$8 sps:$4 sm:$0xff]  }
  0xfa   : > { %2950 = vmatprep.subr.bf16.mxu1 %v4346_v52  ;;  %v4432_v52 = vld [vmem:[%s5247_s13 + $0x580] ss:$8 sps:$4 sm:$0xff]  }
  0xfc   : > { %2910 = vmatpush1.bf16.msra.mxu0 %v4341_v53  ;;  %v4437_v53 = vld [vmem:[%s5247_s13 + $0x494] ss:$8 sps:$4 sm:$0xff]  }
  0xfd   : > { %2951 = vmatpush1.bf16.msra.mxu1 %v4344_v54  ;;  %2911 = vmatprep.subr.bf16.mxu0 %v4349_v55  ;;  %v4440_v54 = vld [vmem:[%s5247_s13 + $0x594] ss:$8 sps:$4 sm:$0xff]   ;;  %v4435_v55 = vld [vmem:[%s5247_s13 + $0x490] ss:$8 sps:$4 sm:$0xff]  }
  0xfe   : > { %2952 = vmatprep.subr.bf16.mxu1 %v4352_v56  ;;  %v4438_v56 = vld [vmem:[%s5247_s13 + $0x590] ss:$8 sps:$4 sm:$0xff]  }
 0x100   : > { %2912 = vmatpush1.bf16.msra.mxu0 %v4347_v57  ;;  %v4443_v57 = vld [vmem:[%s5247_s13 + $0x4a4] ss:$8 sps:$4 sm:$0xff]  }
 0x101   : > { %2953 = vmatpush1.bf16.msra.mxu1 %v4350_v58  ;;  %2913 = vmatprep.subr.bf16.mxu0 %v4355_v59  ;;  %v4446_v58 = vld [vmem:[%s5247_s13 + $0x5a4] ss:$8 sps:$4 sm:$0xff]   ;;  %v4441_v59 = vld [vmem:[%s5247_s13 + $0x4a0] ss:$8 sps:$4 sm:$0xff]  }
 0x102   : > { %2954 = vmatprep.subr.bf16.mxu1 %v4358_v60  ;;  %v4444_v60 = vld [vmem:[%s5247_s13 + $0x5a0] ss:$8 sps:$4 sm:$0xff]  }
 0x104   : > { %2914 = vmatpush1.bf16.msra.mxu0 %v4353_v61  ;;  %v4449_v61 = vld [vmem:[%s5247_s13 + $0x4b4] ss:$8 sps:$4 sm:$0xff]  }
 0x105   : > { %2955 = vmatpush1.bf16.msra.mxu1 %v4356_v62  ;;  %2915 = vmatprep.subr.bf16.mxu0 %v4361_v63  ;;  %v4452_v62 = vld [vmem:[%s5247_s13 + $0x5b4] ss:$8 sps:$4 sm:$0xff]   ;;  %v4447_v63 = vld [vmem:[%s5247_s13 + $0x4b0] ss:$8 sps:$4 sm:$0xff]  }
 0x106   : > { %2956 = vmatprep.subr.bf16.mxu1 %v4364_v0  ;;  %v4450_v0 = vld [vmem:[%s5247_s13 + $0x5b0] ss:$8 sps:$4 sm:$0xff]  }
 0x108   : > { %2916 = vmatpush1.bf16.msra.mxu0 %v4359_v1  ;;  %v4455_v1 = vld [vmem:[%s5247_s13 + $0x4c4] ss:$8 sps:$4 sm:$0xff]  }
 0x109   : > { %2957 = vmatpush1.bf16.msra.mxu1 %v4362_v2  ;;  %2917 = vmatprep.subr.bf16.mxu0 %v4367_v3  ;;  %v4458_v2 = vld [vmem:[%s5247_s13 + $0x5c4] ss:$8 sps:$4 sm:$0xff]   ;;  %v4453_v3 = vld [vmem:[%s5247_s13 + $0x4c0] ss:$8 sps:$4 sm:$0xff]  }
 0x10a   : > { %2958 = vmatprep.subr.bf16.mxu1 %v4370_v4  ;;  %v4456_v4 = vld [vmem:[%s5247_s13 + $0x5c0] ss:$8 sps:$4 sm:$0xff]  }
 0x10c   : > { %2918 = vmatpush1.bf16.msra.mxu0 %v4365_v5  ;;  %v4461_v5 = vld [vmem:[%s5247_s13 + $0x4d4] ss:$8 sps:$4 sm:$0xff]  }
 0x10d   : > { %2959 = vmatpush1.bf16.msra.mxu1 %v4368_v6  ;;  %2919 = vmatprep.subr.bf16.mxu0 %v4373_v7  ;;  %v4464_v6 = vld [vmem:[%s5247_s13 + $0x5d4] ss:$8 sps:$4 sm:$0xff]   ;;  %v4459_v7 = vld [vmem:[%s5247_s13 + $0x4d0] ss:$8 sps:$4 sm:$0xff]  }
 0x10e   : > { %2960 = vmatprep.subr.bf16.mxu1 %v4376_v8  ;;  %v4462_v8 = vld [vmem:[%s5247_s13 + $0x5d0] ss:$8 sps:$4 sm:$0xff]  }
 0x110   : > { %2920 = vmatpush1.bf16.msra.mxu0 %v4371_v9  ;;  %v4467_v9 = vld [vmem:[%s5247_s13 + $0x4e4] ss:$8 sps:$4 sm:$0xff]  }
 0x111   : > { %2961 = vmatpush1.bf16.msra.mxu1 %v4374_v10  ;;  %2971 = vmatprep.subr.bf16.mxu0 %v4381_v11  ;;  %v4470_v10 = vld [vmem:[%s5247_s13 + $0x5e4] ss:$8 sps:$4 sm:$0xff]   ;;  %v4465_v11 = vld [vmem:[%s5247_s13 + $0x4e0] ss:$8 sps:$4 sm:$0xff]  }
 0x112   : > { %3012 = vmatprep.subr.bf16.mxu1 %v4386_v12  ;;  %v4468_v12 = vld [vmem:[%s5247_s13 + $0x5e0] ss:$8 sps:$4 sm:$0xff]  }
 0x113   : > { %2922 = vmatmul.mubr.bf16.vlgmr.msra.gmra.mrb[4].mxu0 %v3603_v13  ;;  %v4473_v13 = vld [vmem:[%s5247_s13 + $0x4f4] ss:$8 sps:$4 sm:$0xff]  }
 0x114   : > { %2963 = vmatmul.mubr.bf16.vlgmr.msra.gmra.mrb[4].mxu1 %v3605_v15  ;;  %2972 = vmatpush1.bf16.msra.mxu0 %v4379_v14  ;;  %v4476_v14 = vld [vmem:[%s5247_s13 + $0x5f4] ss:$8 sps:$4 sm:$0xff]   ;;  %v4471_v15 = vld [vmem:[%s5247_s13 + $0x4f0] ss:$8 sps:$4 sm:$0xff]  }
 0x115   : > { %3013 = vmatpush1.bf16.msra.mxu1 %v4384_v16  ;;  %2973 = vmatprep.subr.bf16.mxu0 %v4389_v17  ;;  %v4474_v16 = vld [vmem:[%s5247_s13 + $0x5f0] ss:$8 sps:$4 sm:$0xff]   ;;  %v4481_v17 = vld [vmem:[%s5247_s13 + $0x604] ss:$8 sps:$4 sm:$0xff]  }
 0x116   : > { %3014 = vmatprep.subr.bf16.mxu1 %v4392_v18  ;;  %3003 = vmatprep.mubr.bf16.mxu0 %v3608_v20  ;;  %v4486_v18 = vld [vmem:[%s5247_s13 + $0x704] ss:$8 sps:$4 sm:$0xff]   ;;  %v4479_v20 = vld [vmem:[%s5247_s13 + $0x600] ss:$8 sps:$4 sm:$0xff]  }
 0x117   : > { %3044 = vmatprep.mubr.bf16.mxu1 %v3610_v24  ;;  %v3609_v24 = vcombine.low %v5419_v21, %v5419_v21 }
 0x118   : > { %2974 = vmatpush1.bf16.msra.mxu0 %v4387_v22  ;;  %v4484_v22 = vld [vmem:[%s5247_s13 + $0x700] ss:$8 sps:$4 sm:$0xff]  }
 0x119   : > { %3015 = vmatpush1.bf16.msra.mxu1 %v4390_v23  ;;  %2975 = vmatprep.subr.bf16.mxu0 %v4395_v25  ;;  %v3607_v23 = vcombine.low %v5414_v19, %v5414_v19  ;;  %v5490_v25 = vld [vmem:[%s5240_s14 + $0x30] sm:$0xff] }
 0x11a   : > { %3016 = vmatprep.subr.bf16.mxu1 %v4398_v26  ;;  %v5493_v26 = vld [vmem:[%s5240_s14 + $0x38] sm:$0xff]  ;;  %v3612_v19 = vcombine.high %v5490_v25, %v5490_v25 }
 0x11b   : > { %v3614_v21 = vcombine.high %v5493_v26, %v5493_v26 }
 0x11c   : > { %2976 = vmatpush1.bf16.msra.mxu0 %v4393_v27  ;;  %v4489_v27 = vld [vmem:[%s5247_s13 + $0x614] ss:$8 sps:$4 sm:$0xff]  }
 0x11d   : > { %3017 = vmatpush1.bf16.msra.mxu1 %v4396_v28  ;;  %2977 = vmatprep.subr.bf16.mxu0 %v4401_v29  ;;  %v4492_v28 = vld [vmem:[%s5247_s13 + $0x714] ss:$8 sps:$4 sm:$0xff]   ;;  %v4487_v29 = vld [vmem:[%s5247_s13 + $0x610] ss:$8 sps:$4 sm:$0xff]  }
 0x11e   : > { %3018 = vmatprep.subr.bf16.mxu1 %v4404_v30  ;;  %v4490_v30 = vld [vmem:[%s5247_s13 + $0x710] ss:$8 sps:$4 sm:$0xff]  }
 0x120   : > { %2978 = vmatpush1.bf16.msra.mxu0 %v4399_v31  ;;  %v4495_v31 = vld [vmem:[%s5247_s13 + $0x624] ss:$8 sps:$4 sm:$0xff]  }
 0x121   : > { %3019 = vmatpush1.bf16.msra.mxu1 %v4402_v32  ;;  %2979 = vmatprep.subr.bf16.mxu0 %v4407_v33  ;;  %v4498_v32 = vld [vmem:[%s5247_s13 + $0x724] ss:$8 sps:$4 sm:$0xff]   ;;  %v4493_v33 = vld [vmem:[%s5247_s13 + $0x620] ss:$8 sps:$4 sm:$0xff]  }
 0x122   : > { %3020 = vmatprep.subr.bf16.mxu1 %v4410_v34  ;;  %v4496_v34 = vld [vmem:[%s5247_s13 + $0x720] ss:$8 sps:$4 sm:$0xff]  }
 0x124   : > { %2980 = vmatpush1.bf16.msra.mxu0 %v4405_v35  ;;  %v4501_v35 = vld [vmem:[%s5247_s13 + $0x634] ss:$8 sps:$4 sm:$0xff]  }
 0x125   : > { %3021 = vmatpush1.bf16.msra.mxu1 %v4408_v36  ;;  %2981 = vmatprep.subr.bf16.mxu0 %v4413_v37  ;;  %v4504_v36 = vld [vmem:[%s5247_s13 + $0x734] ss:$8 sps:$4 sm:$0xff]   ;;  %v4499_v37 = vld [vmem:[%s5247_s13 + $0x630] ss:$8 sps:$4 sm:$0xff]  }
 0x126   : > { %3022 = vmatprep.subr.bf16.mxu1 %v4416_v38  ;;  %v4502_v38 = vld [vmem:[%s5247_s13 + $0x730] ss:$8 sps:$4 sm:$0xff]  }
 0x128   : > { %2982 = vmatpush1.bf16.msra.mxu0 %v4411_v39  ;;  %v4507_v39 = vld [vmem:[%s5247_s13 + $0x644] ss:$8 sps:$4 sm:$0xff]  }
 0x129   : > { %3023 = vmatpush1.bf16.msra.mxu1 %v4414_v40  ;;  %2983 = vmatprep.subr.bf16.mxu0 %v4419_v41  ;;  %v4510_v40 = vld [vmem:[%s5247_s13 + $0x744] ss:$8 sps:$4 sm:$0xff]   ;;  %v4505_v41 = vld [vmem:[%s5247_s13 + $0x640] ss:$8 sps:$4 sm:$0xff]  }
 0x12a   : > { %3024 = vmatprep.subr.bf16.mxu1 %v4422_v42  ;;  %v4508_v42 = vld [vmem:[%s5247_s13 + $0x740] ss:$8 sps:$4 sm:$0xff]  }
 0x12c   : > { %2984 = vmatpush1.bf16.msra.mxu0 %v4417_v43  ;;  %v4513_v43 = vld [vmem:[%s5247_s13 + $0x654] ss:$8 sps:$4 sm:$0xff]  }
 0x12d   : > { %3025 = vmatpush1.bf16.msra.mxu1 %v4420_v44  ;;  %2985 = vmatprep.subr.bf16.mxu0 %v4425_v45  ;;  %v4516_v44 = vld [vmem:[%s5247_s13 + $0x754] ss:$8 sps:$4 sm:$0xff]   ;;  %v4511_v45 = vld [vmem:[%s5247_s13 + $0x650] ss:$8 sps:$4 sm:$0xff]  }
 0x12e   : > { %3026 = vmatprep.subr.bf16.mxu1 %v4428_v46  ;;  %v4514_v46 = vld [vmem:[%s5247_s13 + $0x750] ss:$8 sps:$4 sm:$0xff]  }
 0x130   : > { %2986 = vmatpush1.bf16.msra.mxu0 %v4423_v47  ;;  %v4519_v47 = vld [vmem:[%s5247_s13 + $0x664] ss:$8 sps:$4 sm:$0xff]  }
 0x131   : > { %3027 = vmatpush1.bf16.msra.mxu1 %v4426_v48  ;;  %2987 = vmatprep.subr.bf16.mxu0 %v4431_v49  ;;  %v4522_v48 = vld [vmem:[%s5247_s13 + $0x764] ss:$8 sps:$4 sm:$0xff]   ;;  %v4517_v49 = vld [vmem:[%s5247_s13 + $0x660] ss:$8 sps:$4 sm:$0xff]  }
 0x132   : > { %3028 = vmatprep.subr.bf16.mxu1 %v4434_v50  ;;  %v4520_v50 = vld [vmem:[%s5247_s13 + $0x760] ss:$8 sps:$4 sm:$0xff]  }
 0x134   : > { %2988 = vmatpush1.bf16.msra.mxu0 %v4429_v51  ;;  %v4525_v51 = vld [vmem:[%s5247_s13 + $0x674] ss:$8 sps:$4 sm:$0xff]  }
 0x135   : > { %3029 = vmatpush1.bf16.msra.mxu1 %v4432_v52  ;;  %2989 = vmatprep.subr.bf16.mxu0 %v4437_v53  ;;  %v4528_v52 = vld [vmem:[%s5247_s13 + $0x774] ss:$8 sps:$4 sm:$0xff]   ;;  %v4523_v53 = vld [vmem:[%s5247_s13 + $0x670] ss:$8 sps:$4 sm:$0xff]  }
 0x136   : > { %3030 = vmatprep.subr.bf16.mxu1 %v4440_v54  ;;  %v4526_v54 = vld [vmem:[%s5247_s13 + $0x770] ss:$8 sps:$4 sm:$0xff]  }
 0x138   : > { %2990 = vmatpush1.bf16.msra.mxu0 %v4435_v55  ;;  %v4531_v55 = vld [vmem:[%s5247_s13 + $0x684] ss:$8 sps:$4 sm:$0xff]  }
 0x139   : > { %3031 = vmatpush1.bf16.msra.mxu1 %v4438_v56  ;;  %2991 = vmatprep.subr.bf16.mxu0 %v4443_v57  ;;  %v4534_v56 = vld [vmem:[%s5247_s13 + $0x784] ss:$8 sps:$4 sm:$0xff]   ;;  %v4529_v57 = vld [vmem:[%s5247_s13 + $0x680] ss:$8 sps:$4 sm:$0xff]  }
 0x13a   : > { %3032 = vmatprep.subr.bf16.mxu1 %v4446_v58  ;;  %v4532_v58 = vld [vmem:[%s5247_s13 + $0x780] ss:$8 sps:$4 sm:$0xff]  }
 0x13c   : > { %2992 = vmatpush1.bf16.msra.mxu0 %v4441_v59  ;;  %v4537_v59 = vld [vmem:[%s5247_s13 + $0x694] ss:$8 sps:$4 sm:$0xff]  }
 0x13d   : > { %3033 = vmatpush1.bf16.msra.mxu1 %v4444_v60  ;;  %2993 = vmatprep.subr.bf16.mxu0 %v4449_v61  ;;  %v4540_v60 = vld [vmem:[%s5247_s13 + $0x794] ss:$8 sps:$4 sm:$0xff]   ;;  %v4535_v61 = vld [vmem:[%s5247_s13 + $0x690] ss:$8 sps:$4 sm:$0xff]  }
 0x13e   : > { %3034 = vmatprep.subr.bf16.mxu1 %v4452_v62  ;;  %v4538_v62 = vld [vmem:[%s5247_s13 + $0x790] ss:$8 sps:$4 sm:$0xff]  }
 0x140   : > { %2994 = vmatpush1.bf16.msra.mxu0 %v4447_v63  ;;  %v4543_v63 = vld [vmem:[%s5247_s13 + $0x6a4] ss:$8 sps:$4 sm:$0xff]  }
 0x141   : > { %3035 = vmatpush1.bf16.msra.mxu1 %v4450_v0  ;;  %2995 = vmatprep.subr.bf16.mxu0 %v4455_v1  ;;  %v4546_v0 = vld [vmem:[%s5247_s13 + $0x7a4] ss:$8 sps:$4 sm:$0xff]   ;;  %v4541_v1 = vld [vmem:[%s5247_s13 + $0x6a0] ss:$8 sps:$4 sm:$0xff]  }
 0x142   : > { %3036 = vmatprep.subr.bf16.mxu1 %v4458_v2  ;;  %v4544_v2 = vld [vmem:[%s5247_s13 + $0x7a0] ss:$8 sps:$4 sm:$0xff]  }
 0x144   : > { %2996 = vmatpush1.bf16.msra.mxu0 %v4453_v3  ;;  %v4549_v3 = vld [vmem:[%s5247_s13 + $0x6b4] ss:$8 sps:$4 sm:$0xff]  }
 0x145   : > { %3037 = vmatpush1.bf16.msra.mxu1 %v4456_v4  ;;  %2997 = vmatprep.subr.bf16.mxu0 %v4461_v5  ;;  %v4552_v4 = vld [vmem:[%s5247_s13 + $0x7b4] ss:$8 sps:$4 sm:$0xff]   ;;  %v4547_v5 = vld [vmem:[%s5247_s13 + $0x6b0] ss:$8 sps:$4 sm:$0xff]  }
 0x146   : > { %3038 = vmatprep.subr.bf16.mxu1 %v4464_v6  ;;  %v4550_v6 = vld [vmem:[%s5247_s13 + $0x7b0] ss:$8 sps:$4 sm:$0xff]  }
 0x148   : > { %2998 = vmatpush1.bf16.msra.mxu0 %v4459_v7  ;;  %v4555_v7 = vld [vmem:[%s5247_s13 + $0x6c4] ss:$8 sps:$4 sm:$0xff]  }
 0x149   : > { %3039 = vmatpush1.bf16.msra.mxu1 %v4462_v8  ;;  %2999 = vmatprep.subr.bf16.mxu0 %v4467_v9  ;;  %v4558_v8 = vld [vmem:[%s5247_s13 + $0x7c4] ss:$8 sps:$4 sm:$0xff]   ;;  %v4553_v9 = vld [vmem:[%s5247_s13 + $0x6c0] ss:$8 sps:$4 sm:$0xff]  }
 0x14a   : > { %3040 = vmatprep.subr.bf16.mxu1 %v4470_v10  ;;  %v4556_v10 = vld [vmem:[%s5247_s13 + $0x7c0] ss:$8 sps:$4 sm:$0xff]  }
 0x14c   : > { %3000 = vmatpush1.bf16.msra.mxu0 %v4465_v11  ;;  %v4561_v11 = vld [vmem:[%s5247_s13 + $0x6d4] ss:$8 sps:$4 sm:$0xff]  }
 0x14d   : > { %3041 = vmatpush1.bf16.msra.mxu1 %v4468_v12  ;;  %3001 = vmatprep.subr.bf16.mxu0 %v4473_v13  ;;  %v4564_v12 = vld [vmem:[%s5247_s13 + $0x7d4] ss:$8 sps:$4 sm:$0xff]   ;;  %v4559_v13 = vld [vmem:[%s5247_s13 + $0x6d0] ss:$8 sps:$4 sm:$0xff]  }
 0x14e   : > { %3042 = vmatprep.subr.bf16.mxu1 %v4476_v14  ;;  %v4562_v14 = vld [vmem:[%s5247_s13 + $0x7d0] ss:$8 sps:$4 sm:$0xff]  }
 0x150   : > { %3002 = vmatpush1.bf16.msra.mxu0 %v4471_v15  ;;  %v4567_v15 = vld [vmem:[%s5247_s13 + $0x6e4] ss:$8 sps:$4 sm:$0xff]  }
 0x151   : > { %3043 = vmatpush1.bf16.msra.mxu1 %v4474_v16  ;;  %3053 = vmatprep.subr.bf16.mxu0 %v4481_v17  ;;  %v4570_v16 = vld [vmem:[%s5247_s13 + $0x7e4] ss:$8 sps:$4 sm:$0xff]   ;;  %v4565_v17 = vld [vmem:[%s5247_s13 + $0x6e0] ss:$8 sps:$4 sm:$0xff]  }
 0x152   : > { %3094 = vmatprep.subr.bf16.mxu1 %v4486_v18  ;;  %v4568_v18 = vld [vmem:[%s5247_s13 + $0x7e0] ss:$8 sps:$4 sm:$0xff]  }
 0x153   : > { %3004 = vmatmul.mubr.bf16.vlgmr.msra.gmra.mrb[8].mxu0 %v3607_v23  ;;  %v4571_v23 = vld [vmem:[%s5247_s13 + $0x6f0] ss:$8 sps:$4 sm:$0xff]  }
 0x154   : > { %3045 = vmatmul.mubr.bf16.vlgmr.msra.gmra.mrb[8].mxu1 %v3609_v24  ;;  %3054 = vmatpush1.bf16.msra.mxu0 %v4479_v20  ;;  %v4573_v20 = vld [vmem:[%s5247_s13 + $0x6f4] ss:$8 sps:$4 sm:$0xff]   ;;  %v4574_v24 = vld [vmem:[%s5247_s13 + $0x7f0] ss:$8 sps:$4 sm:$0xff]  }
 0x155   : > { %3095 = vmatpush1.bf16.msra.mxu1 %v4484_v22  ;;  %3055 = vmatprep.subr.bf16.mxu0 %v4489_v27  ;;  %v4576_v22 = vld [vmem:[%s5247_s13 + $0x7f4] ss:$8 sps:$4 sm:$0xff]   ;;  %v4581_v27 = vld [vmem:[%s5247_s13 + $0x804] ss:$8 sps:$4 sm:$0xff]  }
 0x156   : > { %3096 = vmatprep.subr.bf16.mxu1 %v4492_v28  ;;  %3085 = vmatprep.mubr.bf16.mxu0 %v3612_v19  ;;  %v4586_v28 = vld [vmem:[%s5247_s13 + $0x904] ss:$8 sps:$4 sm:$0xff]   ;;  %v5562_v19 = vld [vmem:[%s5240_s14 + $0x40] sm:$0xff] }
 0x157   : > { %3126 = vmatprep.mubr.bf16.mxu1 %v3614_v21  ;;  %v3611_v21 = vcombine.low %v5490_v25, %v5490_v25  ;;  %v3616_v25 = vcombine.high %v5562_v19, %v5562_v19 }
 0x158   : > { %3056 = vmatpush1.bf16.msra.mxu0 %v4487_v29  ;;  %v3613_v29 = vcombine.low %v5493_v26, %v5493_v26 }
 0x159   : > { %3097 = vmatpush1.bf16.msra.mxu1 %v4490_v30  ;;  %3057 = vmatprep.subr.bf16.mxu0 %v4495_v31  ;;  %v5569_v30 = vld [vmem:[%s5240_s14 + $0x48] sm:$0xff] }
 0x15a   : > { %3098 = vmatprep.subr.bf16.mxu1 %v4498_v32  ;;  %v4579_v31 = vld [vmem:[%s5247_s13 + $0x800] ss:$8 sps:$4 sm:$0xff]   ;;  %v3618_v26 = vcombine.high %v5569_v30, %v5569_v30 }
 0x15b   : > { %v4584_v32 = vld [vmem:[%s5247_s13 + $0x900] ss:$8 sps:$4 sm:$0xff]  }
 0x15c   : > { %3058 = vmatpush1.bf16.msra.mxu0 %v4493_v33  ;;  %v4589_v33 = vld [vmem:[%s5247_s13 + $0x814] ss:$8 sps:$4 sm:$0xff]  }
 0x15d   : > { %3099 = vmatpush1.bf16.msra.mxu1 %v4496_v34  ;;  %3059 = vmatprep.subr.bf16.mxu0 %v4501_v35  ;;  %v4592_v34 = vld [vmem:[%s5247_s13 + $0x914] ss:$8 sps:$4 sm:$0xff]   ;;  %v4587_v35 = vld [vmem:[%s5247_s13 + $0x810] ss:$8 sps:$4 sm:$0xff]  }
 0x15e   : > { %3100 = vmatprep.subr.bf16.mxu1 %v4504_v36  ;;  %v4590_v36 = vld [vmem:[%s5247_s13 + $0x910] ss:$8 sps:$4 sm:$0xff]  }
 0x160   : > { %3060 = vmatpush1.bf16.msra.mxu0 %v4499_v37  ;;  %v4595_v37 = vld [vmem:[%s5247_s13 + $0x824] ss:$8 sps:$4 sm:$0xff]  }
 0x161   : > { %3101 = vmatpush1.bf16.msra.mxu1 %v4502_v38  ;;  %3061 = vmatprep.subr.bf16.mxu0 %v4507_v39  ;;  %v4598_v38 = vld [vmem:[%s5247_s13 + $0x924] ss:$8 sps:$4 sm:$0xff]   ;;  %v4593_v39 = vld [vmem:[%s5247_s13 + $0x820] ss:$8 sps:$4 sm:$0xff]  }
 0x162   : > { %3102 = vmatprep.subr.bf16.mxu1 %v4510_v40  ;;  %v4596_v40 = vld [vmem:[%s5247_s13 + $0x920] ss:$8 sps:$4 sm:$0xff]  }
 0x164   : > { %3062 = vmatpush1.bf16.msra.mxu0 %v4505_v41  ;;  %v4601_v41 = vld [vmem:[%s5247_s13 + $0x834] ss:$8 sps:$4 sm:$0xff]  }
 0x165   : > { %3103 = vmatpush1.bf16.msra.mxu1 %v4508_v42  ;;  %3063 = vmatprep.subr.bf16.mxu0 %v4513_v43  ;;  %v4604_v42 = vld [vmem:[%s5247_s13 + $0x934] ss:$8 sps:$4 sm:$0xff]   ;;  %v4599_v43 = vld [vmem:[%s5247_s13 + $0x830] ss:$8 sps:$4 sm:$0xff]  }
 0x166   : > { %3104 = vmatprep.subr.bf16.mxu1 %v4516_v44  ;;  %v4602_v44 = vld [vmem:[%s5247_s13 + $0x930] ss:$8 sps:$4 sm:$0xff]  }
 0x168   : > { %3064 = vmatpush1.bf16.msra.mxu0 %v4511_v45  ;;  %v4607_v45 = vld [vmem:[%s5247_s13 + $0x844] ss:$8 sps:$4 sm:$0xff]  }
 0x169   : > { %3105 = vmatpush1.bf16.msra.mxu1 %v4514_v46  ;;  %3065 = vmatprep.subr.bf16.mxu0 %v4519_v47  ;;  %v4610_v46 = vld [vmem:[%s5247_s13 + $0x944] ss:$8 sps:$4 sm:$0xff]   ;;  %v4605_v47 = vld [vmem:[%s5247_s13 + $0x840] ss:$8 sps:$4 sm:$0xff]  }
 0x16a   : > { %3106 = vmatprep.subr.bf16.mxu1 %v4522_v48  ;;  %v4608_v48 = vld [vmem:[%s5247_s13 + $0x940] ss:$8 sps:$4 sm:$0xff]  }
 0x16c   : > { %3066 = vmatpush1.bf16.msra.mxu0 %v4517_v49  ;;  %v4613_v49 = vld [vmem:[%s5247_s13 + $0x854] ss:$8 sps:$4 sm:$0xff]  }
 0x16d   : > { %3107 = vmatpush1.bf16.msra.mxu1 %v4520_v50  ;;  %3067 = vmatprep.subr.bf16.mxu0 %v4525_v51  ;;  %v4616_v50 = vld [vmem:[%s5247_s13 + $0x954] ss:$8 sps:$4 sm:$0xff]   ;;  %v4611_v51 = vld [vmem:[%s5247_s13 + $0x850] ss:$8 sps:$4 sm:$0xff]  }
 0x16e   : > { %3108 = vmatprep.subr.bf16.mxu1 %v4528_v52  ;;  %v4614_v52 = vld [vmem:[%s5247_s13 + $0x950] ss:$8 sps:$4 sm:$0xff]  }
 0x170   : > { %3068 = vmatpush1.bf16.msra.mxu0 %v4523_v53  ;;  %v4619_v53 = vld [vmem:[%s5247_s13 + $0x864] ss:$8 sps:$4 sm:$0xff]  }
 0x171   : > { %3109 = vmatpush1.bf16.msra.mxu1 %v4526_v54  ;;  %3069 = vmatprep.subr.bf16.mxu0 %v4531_v55  ;;  %v4622_v54 = vld [vmem:[%s5247_s13 + $0x964] ss:$8 sps:$4 sm:$0xff]  }
 0x172   : > { %3110 = vmatprep.subr.bf16.mxu1 %v4534_v56 }
 0x174   : > { %3070 = vmatpush1.bf16.msra.mxu0 %v4529_v57 }
 0x175   : > { %3111 = vmatpush1.bf16.msra.mxu1 %v4532_v58  ;;  %3071 = vmatprep.subr.bf16.mxu0 %v4537_v59 }
 0x176   : > { %3112 = vmatprep.subr.bf16.mxu1 %v4540_v60 }
 0x178   : > { %3072 = vmatpush1.bf16.msra.mxu0 %v4535_v61 }
 0x179   : > { %3113 = vmatpush1.bf16.msra.mxu1 %v4538_v62  ;;  %3073 = vmatprep.subr.bf16.mxu0 %v4543_v63  ;;  %v4617_v62 = vld [vmem:[%s5247_s13 + $0x860] ss:$8 sps:$4 sm:$0xff]  }
 0x17a   : > { %3114 = vmatprep.subr.bf16.mxu1 %v4546_v0  ;;  %v4620_v63 = vld [vmem:[%s5247_s13 + $0x960] ss:$8 sps:$4 sm:$0xff]  }
 0x17c   : > { %3074 = vmatpush1.bf16.msra.mxu0 %v4541_v1 }
 0x17d   : > { %3115 = vmatpush1.bf16.msra.mxu1 %v4544_v2  ;;  %3075 = vmatprep.subr.bf16.mxu0 %v4549_v3  ;;  %v4625_v2 = vld [vmem:[%s5247_s13 + $0x874] ss:$8 sps:$4 sm:$0xff]  }
 0x17e   : > { %3116 = vmatprep.subr.bf16.mxu1 %v4552_v4  ;;  %v4628_v3 = vld [vmem:[%s5247_s13 + $0x974] ss:$8 sps:$4 sm:$0xff]  }
 0x180   : > { %3076 = vmatpush1.bf16.msra.mxu0 %v4547_v5  ;;  %v4623_v5 = vld [vmem:[%s5247_s13 + $0x870] ss:$8 sps:$4 sm:$0xff]  }
 0x181   : > { %3117 = vmatpush1.bf16.msra.mxu1 %v4550_v6  ;;  %3077 = vmatprep.subr.bf16.mxu0 %v4555_v7  ;;  %v4626_v6 = vld [vmem:[%s5247_s13 + $0x970] ss:$8 sps:$4 sm:$0xff]   ;;  %v4631_v7 = vld [vmem:[%s5247_s13 + $0x884] ss:$8 sps:$4 sm:$0xff]  }
 0x182   : > { %3118 = vmatprep.subr.bf16.mxu1 %v4558_v8  ;;  %v4634_v8 = vld [vmem:[%s5247_s13 + $0x984] ss:$8 sps:$4 sm:$0xff]  }
 0x184   : > { %3078 = vmatpush1.bf16.msra.mxu0 %v4553_v9  ;;  %v4629_v9 = vld [vmem:[%s5247_s13 + $0x880] ss:$8 sps:$4 sm:$0xff]  }
 0x185   : > { %3119 = vmatpush1.bf16.msra.mxu1 %v4556_v10  ;;  %3079 = vmatprep.subr.bf16.mxu0 %v4561_v11  ;;  %v4632_v10 = vld [vmem:[%s5247_s13 + $0x980] ss:$8 sps:$4 sm:$0xff]   ;;  %v4637_v11 = vld [vmem:[%s5247_s13 + $0x894] ss:$8 sps:$4 sm:$0xff]  }
 0x186   : > { %3120 = vmatprep.subr.bf16.mxu1 %v4564_v12  ;;  %v4640_v12 = vld [vmem:[%s5247_s13 + $0x994] ss:$8 sps:$4 sm:$0xff]  }
 0x188   : > { %3080 = vmatpush1.bf16.msra.mxu0 %v4559_v13  ;;  %v4635_v13 = vld [vmem:[%s5247_s13 + $0x890] ss:$8 sps:$4 sm:$0xff]  }
 0x189   : > { %3121 = vmatpush1.bf16.msra.mxu1 %v4562_v14  ;;  %3081 = vmatprep.subr.bf16.mxu0 %v4567_v15  ;;  %v4638_v14 = vld [vmem:[%s5247_s13 + $0x990] ss:$8 sps:$4 sm:$0xff]   ;;  %v4643_v15 = vld [vmem:[%s5247_s13 + $0x8a4] ss:$8 sps:$4 sm:$0xff]  }
 0x18a   : > { %3122 = vmatprep.subr.bf16.mxu1 %v4570_v16  ;;  %v4646_v16 = vld [vmem:[%s5247_s13 + $0x9a4] ss:$8 sps:$4 sm:$0xff]  }
 0x18c   : > { %3082 = vmatpush1.bf16.msra.mxu0 %v4565_v17  ;;  %v4641_v17 = vld [vmem:[%s5247_s13 + $0x8a0] ss:$8 sps:$4 sm:$0xff]  }
 0x18d   : > { %3123 = vmatpush1.bf16.msra.mxu1 %v4568_v18  ;;  %3083 = vmatprep.subr.bf16.mxu0 %v4573_v20  ;;  %v4644_v18 = vld [vmem:[%s5247_s13 + $0x9a0] ss:$8 sps:$4 sm:$0xff]   ;;  %v4649_v20 = vld [vmem:[%s5247_s13 + $0x8b4] ss:$8 sps:$4 sm:$0xff]  }
 0x18e   : > { %3124 = vmatprep.subr.bf16.mxu1 %v4576_v22  ;;  %v4652_v22 = vld [vmem:[%s5247_s13 + $0x9b4] ss:$8 sps:$4 sm:$0xff]  }
 0x190   : > { %3084 = vmatpush1.bf16.msra.mxu0 %v4571_v23  ;;  %v4647_v23 = vld [vmem:[%s5247_s13 + $0x8b0] ss:$8 sps:$4 sm:$0xff]  }
 0x191   : > { %3125 = vmatpush1.bf16.msra.mxu1 %v4574_v24  ;;  %3135 = vmatprep.subr.bf16.mxu0 %v4581_v27  ;;  %v4650_v24 = vld [vmem:[%s5247_s13 + $0x9b0] ss:$8 sps:$4 sm:$0xff]   ;;  %v4655_v27 = vld [vmem:[%s5247_s13 + $0x8c4] ss:$8 sps:$4 sm:$0xff]  }
 0x192   : > { %3176 = vmatprep.subr.bf16.mxu1 %v4586_v28  ;;  %v4658_v28 = vld [vmem:[%s5247_s13 + $0x9c4] ss:$8 sps:$4 sm:$0xff]  }
 0x193   : > { %3086 = vmatmul.mubr.bf16.vlgmr.msra.gmra.mrb[12].mxu0 %v3611_v21  ;;  %v4653_v21 = vld [vmem:[%s5247_s13 + $0x8c0] ss:$8 sps:$4 sm:$0xff]  }
 0x194   : > { %3127 = vmatmul.mubr.bf16.vlgmr.msra.gmra.mrb[12].mxu1 %v3613_v29  ;;  %3136 = vmatpush1.bf16.msra.mxu0 %v4579_v31  ;;  %v4656_v29 = vld [vmem:[%s5247_s13 + $0x9c0] ss:$8 sps:$4 sm:$0xff]   ;;  %v4661_v31 = vld [vmem:[%s5247_s13 + $0x8d4] ss:$8 sps:$4 sm:$0xff]  }
 0x195   : > { %3177 = vmatpush1.bf16.msra.mxu1 %v4584_v32  ;;  %3137 = vmatprep.subr.bf16.mxu0 %v4589_v33  ;;  %v4664_v32 = vld [vmem:[%s5247_s13 + $0x9d4] ss:$8 sps:$4 sm:$0xff]   ;;  %v4659_v33 = vld [vmem:[%s5247_s13 + $0x8d0] ss:$8 sps:$4 sm:$0xff]  }
 0x196   : > { %3178 = vmatprep.subr.bf16.mxu1 %v4592_v34  ;;  %3167 = vmatprep.mubr.bf16.mxu0 %v3616_v25  ;;  %v4662_v34 = vld [vmem:[%s5247_s13 + $0x9d0] ss:$8 sps:$4 sm:$0xff]   ;;  %v4667_v25 = vld [vmem:[%s5247_s13 + $0x8e4] ss:$8 sps:$4 sm:$0xff]  }
 0x197   : > { %3208 = vmatprep.mubr.bf16.mxu1 %v3618_v26  ;;  %v4670_v26 = vld [vmem:[%s5247_s13 + $0x9e4] ss:$8 sps:$4 sm:$0xff]  }
 0x198   : > { %3138 = vmatpush1.bf16.msra.mxu0 %v4587_v35  ;;  %v4665_v35 = vld [vmem:[%s5247_s13 + $0x8e0] ss:$8 sps:$4 sm:$0xff]  }
 0x199   : > { %3179 = vmatpush1.bf16.msra.mxu1 %v4590_v36  ;;  %3139 = vmatprep.subr.bf16.mxu0 %v4595_v37  ;;  %v4668_v36 = vld [vmem:[%s5247_s13 + $0x9e0] ss:$8 sps:$4 sm:$0xff]   ;;  %v4673_v37 = vld [vmem:[%s5247_s13 + $0x8f4] ss:$8 sps:$4 sm:$0xff]  }
 0x19a   : > { %3180 = vmatprep.subr.bf16.mxu1 %v4598_v38  ;;  %v4676_v38 = vld [vmem:[%s5247_s13 + $0x9f4] ss:$8 sps:$4 sm:$0xff]  }
 0x19c   : > { %3140 = vmatpush1.bf16.msra.mxu0 %v4593_v39  ;;  %v4671_v39 = vld [vmem:[%s5247_s13 + $0x8f0] ss:$8 sps:$4 sm:$0xff]  }
 0x19d   : > { %3181 = vmatpush1.bf16.msra.mxu1 %v4596_v40  ;;  %3141 = vmatprep.subr.bf16.mxu0 %v4601_v41  ;;  %v4674_v40 = vld [vmem:[%s5247_s13 + $0x9f0] ss:$8 sps:$4 sm:$0xff]   ;;  %v4681_v41 = vld [vmem:[%s5247_s13 + $0xa04] ss:$8 sps:$4 sm:$0xff]  }
 0x19e   : > { %3182 = vmatprep.subr.bf16.mxu1 %v4604_v42  ;;  %v4686_v42 = vld [vmem:[%s5247_s13 + $0xb04] ss:$8 sps:$4 sm:$0xff]  }
 0x1a0   : > { %3142 = vmatpush1.bf16.msra.mxu0 %v4599_v43  ;;  %v3615_v43 = vcombine.low %v5562_v19, %v5562_v19 }
 0x1a1   : > { %3183 = vmatpush1.bf16.msra.mxu1 %v4602_v44  ;;  %3143 = vmatprep.subr.bf16.mxu0 %v4607_v45  ;;  %v3617_v44 = vcombine.low %v5569_v30, %v5569_v30  ;;  %v5648_v45 = vld [vmem:[%s5240_s14 + $0x50] sm:$0xff] }
 0x1a2   : > { %3184 = vmatprep.subr.bf16.mxu1 %v4610_v46  ;;  %v5651_v46 = vld [vmem:[%s5240_s14 + $0x58] sm:$0xff]  ;;  %v3620_v19 = vcombine.high %v5648_v45, %v5648_v45 }
 0x1a3   : > { %v3622_v30 = vcombine.high %v5651_v46, %v5651_v46 }
 0x1a4   : > { %3144 = vmatpush1.bf16.msra.mxu0 %v4605_v47  ;;  %v4679_v47 = vld [vmem:[%s5247_s13 + $0xa00] ss:$8 sps:$4 sm:$0xff]  }
 0x1a5   : > { %3185 = vmatpush1.bf16.msra.mxu1 %v4608_v48  ;;  %3145 = vmatprep.subr.bf16.mxu0 %v4613_v49  ;;  %v4684_v48 = vld [vmem:[%s5247_s13 + $0xb00] ss:$8 sps:$4 sm:$0xff]   ;;  %v4689_v49 = vld [vmem:[%s5247_s13 + $0xa14] ss:$8 sps:$4 sm:$0xff]  }
 0x1a6   : > { %3186 = vmatprep.subr.bf16.mxu1 %v4616_v50  ;;  %v2841_v55 = vpop.f32.mrb[0].mxu0  ;;  %v4692_v50 = vld [vmem:[%s5247_s13 + $0xb14] ss:$8 sps:$4 sm:$0xff]  }
 0x1a7   : > { %v2882_v56 = vpop.f32.mrb[0].mxu1  ;;  %v2843_v58 = vpop.f32.mrb[1].mxu0 }
 0x1a8   : > { %v5599_v57 = vadd.f32 %v2882_v56, %v2841_v55  ;;  %v2884_v59 = vpop.f32.mrb[1].mxu1  ;;  %v2845_v61 = vpop.f32.mrb[2].mxu0  ;;  %3146 = vmatpush1.bf16.msra.mxu0 %v4611_v51  ;;  %v4687_v51 = vld [vmem:[%s5247_s13 + $0xa10] ss:$8 sps:$4 sm:$0xff]   ;;  %v4693_v55 = vld [vmem:[%s5247_s13 + $0xa20] ss:$8 sps:$4 sm:$0xff]  }
 0x1a9   : > { %v5601_v60 = vadd.f32 %v2884_v59, %v2843_v58  ;;  %3187 = vmatpush1.bf16.msra.mxu1 %v4614_v52  ;;  %v2886_v0 = vpop.f32.mrb[2].mxu1  ;;  %v2846_v1 = vpop.f32.mrb[3].mxu0  ;;  %3147 = vmatprep.subr.bf16.mxu0 %v4619_v53  ;;  %v4690_v52 = vld [vmem:[%s5247_s13 + $0xb10] ss:$8 sps:$4 sm:$0xff]   ;;  %v4695_v53 = vld [vmem:[%s5247_s13 + $0xa24] ss:$8 sps:$4 sm:$0xff]  }
 0x1aa   : > { %3188 = vmatprep.subr.bf16.mxu1 %v4622_v54  ;;  %v2887_v4 = vpop.f32.mrb[3].mxu1  ;;  %v4698_v54 = vld [vmem:[%s5247_s13 + $0xb24] ss:$8 sps:$4 sm:$0xff]   ;;  %v4696_v56 = vld [vmem:[%s5247_s13 + $0xb20] ss:$8 sps:$4 sm:$0xff]  }
 0x1ab   : > { %v4701_v58 = vld [vmem:[%s5247_s13 + $0xa34] ss:$8 sps:$4 sm:$0xff]   ;;  %v4699_v61 = vld [vmem:[%s5247_s13 + $0xa30] ss:$8 sps:$4 sm:$0xff]   ;;  %v4710_v0 = vld [vmem:[%s5247_s13 + $0xb44] ss:$8 sps:$4 sm:$0xff]  }
 0x1ac   : > { %3148 = vmatpush1.bf16.msra.mxu0 %v4617_v62  ;;  %v4704_v59 = vld [vmem:[%s5247_s13 + $0xb34] ss:$8 sps:$4 sm:$0xff]   ;;  %v4702_v62 = vld [vmem:[%s5247_s13 + $0xb30] ss:$8 sps:$4 sm:$0xff]   ;;  %v4705_v1 = vld [vmem:[%s5247_s13 + $0xa40] ss:$8 sps:$4 sm:$0xff]  }
 0x1ad   : > { %3189 = vmatpush1.bf16.msra.mxu1 %v4620_v63  ;;  %3149 = vmatprep.subr.bf16.mxu0 %v4625_v2  ;;  %v4707_v63 = vld [vmem:[%s5247_s13 + $0xa44] ss:$8 sps:$4 sm:$0xff]   ;;  %v4708_v2 = vld [vmem:[%s5247_s13 + $0xb40] ss:$8 sps:$4 sm:$0xff]   ;;  %v4716_v4 = vld [vmem:[%s5247_s13 + $0xb54] ss:$8 sps:$4 sm:$0xff]  }
 0x1ae   : > { %3190 = vmatprep.subr.bf16.mxu1 %v4628_v3  ;;  %v4713_v3 = vld [vmem:[%s5247_s13 + $0xa54] ss:$8 sps:$4 sm:$0xff]  }
 0x1b0   : > { %3150 = vmatpush1.bf16.msra.mxu0 %v4623_v5  ;;  %v4711_v5 = vld [vmem:[%s5247_s13 + $0xa50] ss:$8 sps:$4 sm:$0xff]  }
 0x1b1   : > { %3191 = vmatpush1.bf16.msra.mxu1 %v4626_v6  ;;  %3151 = vmatprep.subr.bf16.mxu0 %v4631_v7  ;;  %v4714_v6 = vld [vmem:[%s5247_s13 + $0xb50] ss:$8 sps:$4 sm:$0xff]   ;;  %v4719_v7 = vld [vmem:[%s5247_s13 + $0xa64] ss:$8 sps:$4 sm:$0xff]  }
 0x1b2   : > { %3192 = vmatprep.subr.bf16.mxu1 %v4634_v8  ;;  %v4722_v8 = vld [vmem:[%s5247_s13 + $0xb64] ss:$8 sps:$4 sm:$0xff]  }
 0x1b4   : > { %3152 = vmatpush1.bf16.msra.mxu0 %v4629_v9 }
 0x1b5   : > { %3193 = vmatpush1.bf16.msra.mxu1 %v4632_v10  ;;  %3153 = vmatprep.subr.bf16.mxu0 %v4637_v11 }
 0x1b6   : > { %3194 = vmatprep.subr.bf16.mxu1 %v4640_v12 }
 0x1b8   : > { %3154 = vmatpush1.bf16.msra.mxu0 %v4635_v13 }
 0x1b9   : > { %3195 = vmatpush1.bf16.msra.mxu1 %v4638_v14  ;;  %3155 = vmatprep.subr.bf16.mxu0 %v4643_v15 }
 0x1ba   : > { %3196 = vmatprep.subr.bf16.mxu1 %v4646_v16  ;;  %v4717_v16 = vld [vmem:[%s5247_s13 + $0xa60] ss:$8 sps:$4 sm:$0xff]  }
 0x1bc   : > { %3156 = vmatpush1.bf16.msra.mxu0 %v4641_v17  ;;  %v4720_v17 = vld [vmem:[%s5247_s13 + $0xb60] ss:$8 sps:$4 sm:$0xff]  }
 0x1bd   : > { %3197 = vmatpush1.bf16.msra.mxu1 %v4644_v18  ;;  %3157 = vmatprep.subr.bf16.mxu0 %v4649_v20 }
 0x1be   : > { %3198 = vmatprep.subr.bf16.mxu1 %v4652_v22 }
 0x1c0   : > { %3158 = vmatpush1.bf16.msra.mxu0 %v4647_v23  ;;  %v4728_v23 = vld [vmem:[%s5247_s13 + $0xb74] ss:$8 sps:$4 sm:$0xff]  }
 0x1c1   : > { %3199 = vmatpush1.bf16.msra.mxu1 %v4650_v24  ;;  %3159 = vmatprep.subr.bf16.mxu0 %v4655_v27  ;;  %v4723_v27 = vld [vmem:[%s5247_s13 + $0xa70] ss:$8 sps:$4 sm:$0xff]  }
 0x1c2   : > { %3200 = vmatprep.subr.bf16.mxu1 %v4658_v28  ;;  %v4726_v28 = vld [vmem:[%s5247_s13 + $0xb70] ss:$8 sps:$4 sm:$0xff]  }
 0x1c4   : > { %3160 = vmatpush1.bf16.msra.mxu0 %v4653_v21  ;;  %v4731_v21 = vld [vmem:[%s5247_s13 + $0xa84] ss:$8 sps:$4 sm:$0xff]  }
 0x1c5   : > { %3201 = vmatpush1.bf16.msra.mxu1 %v4656_v29  ;;  %3161 = vmatprep.subr.bf16.mxu0 %v4661_v31  ;;  %v4734_v29 = vld [vmem:[%s5247_s13 + $0xb84] ss:$8 sps:$4 sm:$0xff]   ;;  %v4729_v31 = vld [vmem:[%s5247_s13 + $0xa80] ss:$8 sps:$4 sm:$0xff]  }
 0x1c6   : > { %3202 = vmatprep.subr.bf16.mxu1 %v4664_v32  ;;  %v4732_v32 = vld [vmem:[%s5247_s13 + $0xb80] ss:$8 sps:$4 sm:$0xff]  }
 0x1c8   : > { %3162 = vmatpush1.bf16.msra.mxu0 %v4659_v33  ;;  %v4737_v33 = vld [vmem:[%s5247_s13 + $0xa94] ss:$8 sps:$4 sm:$0xff]  }
 0x1c9   : > { %3203 = vmatpush1.bf16.msra.mxu1 %v4662_v34  ;;  %3163 = vmatprep.subr.bf16.mxu0 %v4667_v25  ;;  %v4740_v34 = vld [vmem:[%s5247_s13 + $0xb94] ss:$8 sps:$4 sm:$0xff]   ;;  %v4735_v25 = vld [vmem:[%s5247_s13 + $0xa90] ss:$8 sps:$4 sm:$0xff]  }
 0x1ca   : > { %3204 = vmatprep.subr.bf16.mxu1 %v4670_v26  ;;  %v4738_v26 = vld [vmem:[%s5247_s13 + $0xb90] ss:$8 sps:$4 sm:$0xff]  }
 0x1cc   : > { %3164 = vmatpush1.bf16.msra.mxu0 %v4665_v35  ;;  %v4743_v35 = vld [vmem:[%s5247_s13 + $0xaa4] ss:$8 sps:$4 sm:$0xff]  }
 0x1cd   : > { %3205 = vmatpush1.bf16.msra.mxu1 %v4668_v36  ;;  %3165 = vmatprep.subr.bf16.mxu0 %v4673_v37  ;;  %v4746_v36 = vld [vmem:[%s5247_s13 + $0xba4] ss:$8 sps:$4 sm:$0xff]   ;;  %v4741_v37 = vld [vmem:[%s5247_s13 + $0xaa0] ss:$8 sps:$4 sm:$0xff]  }
 0x1ce   : > { %3206 = vmatprep.subr.bf16.mxu1 %v4676_v38  ;;  %v4744_v38 = vld [vmem:[%s5247_s13 + $0xba0] ss:$8 sps:$4 sm:$0xff]  }
 0x1d0   : > { %3166 = vmatpush1.bf16.msra.mxu0 %v4671_v39  ;;  %v4749_v39 = vld [vmem:[%s5247_s13 + $0xab4] ss:$8 sps:$4 sm:$0xff]  }
 0x1d1   : > { %3207 = vmatpush1.bf16.msra.mxu1 %v4674_v40  ;;  %3217 = vmatprep.subr.bf16.mxu0 %v4681_v41  ;;  %v4752_v40 = vld [vmem:[%s5247_s13 + $0xbb4] ss:$8 sps:$4 sm:$0xff]   ;;  %v4747_v41 = vld [vmem:[%s5247_s13 + $0xab0] ss:$8 sps:$4 sm:$0xff]  }
 0x1d2   : > { %3258 = vmatprep.subr.bf16.mxu1 %v4686_v42  ;;  %v4750_v42 = vld [vmem:[%s5247_s13 + $0xbb0] ss:$8 sps:$4 sm:$0xff]  }
 0x1d3   : > { %3168 = vmatmul.mubr.bf16.vlgmr.msra.gmra.mrb[16].mxu0 %v3615_v43  ;;  %v4755_v43 = vld [vmem:[%s5247_s13 + $0xac4] ss:$8 sps:$4 sm:$0xff]  }
 0x1d4   : > { %3209 = vmatmul.mubr.bf16.vlgmr.msra.gmra.mrb[16].mxu1 %v3617_v44  ;;  %3218 = vmatpush1.bf16.msra.mxu0 %v4679_v47  ;;  %v4758_v44 = vld [vmem:[%s5247_s13 + $0xbc4] ss:$8 sps:$4 sm:$0xff]   ;;  %v4753_v47 = vld [vmem:[%s5247_s13 + $0xac0] ss:$8 sps:$4 sm:$0xff]  }
 0x1d5   : > { %3259 = vmatpush1.bf16.msra.mxu1 %v4684_v48  ;;  %3219 = vmatprep.subr.bf16.mxu0 %v4689_v49  ;;  %v4756_v48 = vld [vmem:[%s5247_s13 + $0xbc0] ss:$8 sps:$4 sm:$0xff]   ;;  %v4761_v49 = vld [vmem:[%s5247_s13 + $0xad4] ss:$8 sps:$4 sm:$0xff]  }
 0x1d6   : > { %3260 = vmatprep.subr.bf16.mxu1 %v4692_v50  ;;  %3249 = vmatprep.mubr.bf16.mxu0 %v3620_v19  ;;  %v4764_v50 = vld [vmem:[%s5247_s13 + $0xbd4] ss:$8 sps:$4 sm:$0xff]   ;;  %v4759_v19 = vld [vmem:[%s5247_s13 + $0xad0] ss:$8 sps:$4 sm:$0xff]  }
 0x1d7   : > { %3290 = vmatprep.mubr.bf16.mxu1 %v3622_v30  ;;  %v4762_v30 = vld [vmem:[%s5247_s13 + $0xbd0] ss:$8 sps:$4 sm:$0xff]  }
 0x1d8   : > { %3220 = vmatpush1.bf16.msra.mxu0 %v4687_v51  ;;  %v4767_v51 = vld [vmem:[%s5247_s13 + $0xae4] ss:$8 sps:$4 sm:$0xff]  }
 0x1d9   : > { %3261 = vmatpush1.bf16.msra.mxu1 %v4690_v52  ;;  %3221 = vmatprep.subr.bf16.mxu0 %v4695_v53  ;;  %v4770_v52 = vld [vmem:[%s5247_s13 + $0xbe4] ss:$8 sps:$4 sm:$0xff]   ;;  %v4765_v53 = vld [vmem:[%s5247_s13 + $0xae0] ss:$8 sps:$4 sm:$0xff]  }
 0x1da   : > { %3262 = vmatprep.subr.bf16.mxu1 %v4698_v54  ;;  %v4768_v54 = vld [vmem:[%s5247_s13 + $0xbe0] ss:$8 sps:$4 sm:$0xff]  }
 0x1dc   : > { %3222 = vmatpush1.bf16.msra.mxu0 %v4693_v55  ;;  %v4773_v55 = vld [vmem:[%s5247_s13 + $0xaf4] ss:$8 sps:$4 sm:$0xff]  }
 0x1dd   : > { %3263 = vmatpush1.bf16.msra.mxu1 %v4696_v56  ;;  %3223 = vmatprep.subr.bf16.mxu0 %v4701_v58  ;;  %v4776_v56 = vld [vmem:[%s5247_s13 + $0xbf4] ss:$8 sps:$4 sm:$0xff]   ;;  %v4771_v58 = vld [vmem:[%s5247_s13 + $0xaf0] ss:$8 sps:$4 sm:$0xff]  }
 0x1de   : > { %3264 = vmatprep.subr.bf16.mxu1 %v4704_v59  ;;  %v4774_v59 = vld [vmem:[%s5247_s13 + $0xbf0] ss:$8 sps:$4 sm:$0xff]  }
 0x1e0   : > { %3224 = vmatpush1.bf16.msra.mxu0 %v4699_v61  ;;  %v4781_v61 = vld [vmem:[%s5247_s13 + $0xc04] ss:$8 sps:$4 sm:$0xff]  }
 0x1e1   : > { %3265 = vmatpush1.bf16.msra.mxu1 %v4702_v62  ;;  %3225 = vmatprep.subr.bf16.mxu0 %v4707_v63  ;;  %v3619_v62 = vcombine.low %v5648_v45, %v5648_v45  ;;  %v3621_v63 = vcombine.low %v5651_v46, %v5651_v46  ;;  %v4789_v45 = vld [vmem:[%s5247_s13 + $0xc24] ss:$8 sps:$4 sm:$0xff]   ;;  %v4787_v46 = vld [vmem:[%s5247_s13 + $0xc20] ss:$8 sps:$4 sm:$0xff]  }
 0x1e2   : > { %3266 = vmatprep.subr.bf16.mxu1 %v4710_v0  ;;  %v4779_v0 = vld [vmem:[%s5247_s13 + $0xc00] ss:$8 sps:$4 sm:$0xff]  }
 0x1e4   : > { %3226 = vmatpush1.bf16.msra.mxu0 %v4705_v1  ;;  %v4786_v1 = vld [vmem:[%s5247_s13 + $0xc14] ss:$8 sps:$4 sm:$0xff]  }
 0x1e5   : > { %3267 = vmatpush1.bf16.msra.mxu1 %v4708_v2  ;;  %3227 = vmatprep.subr.bf16.mxu0 %v4713_v3  ;;  %v4784_v2 = vld [vmem:[%s5247_s13 + $0xc10] ss:$8 sps:$4 sm:$0xff]   ;;  %v5015_v3 = vmov 0  }
 0x1e6   : > { %3268 = vmatprep.subr.bf16.mxu1 %v4716_v4  ;;  %v2923_v9 = vpop.f32.mrb[4].mxu0  ;;  %v4792_v4 = vld [vmem:[%s5247_s13 + $0xc34] ss:$8 sps:$4 sm:$0xff]  }
 0x1e7   : > { %v2964_v10 = vpop.f32.mrb[4].mxu1  ;;  %v2924_v11 = vadd.f32 %v2923_v9, %v5599_v57  ;;  %v2925_v12 = vpop.f32.mrb[5].mxu0  ;;  %v4725_v57 = vld [vmem:[%s5247_s13 + $0xa74] ss:$8 sps:$4 sm:$0xff]   ;;  %v4796_v9 = vld [vmem:[%s5247_s13 + $0xc50] ss:$8 sps:$4 sm:$0xff]  }
 0x1e8   : > { %v2966_v13 = vpop.f32.mrb[5].mxu1  ;;  %v2926_v14 = vadd.f32 %v2925_v12, %v5601_v60  ;;  %v2927_v15 = vpop.f32.mrb[6].mxu0  ;;  %3228 = vmatpush1.bf16.msra.mxu0 %v4711_v5  ;;  %v4790_v5 = vld [vmem:[%s5247_s13 + $0xc30] ss:$8 sps:$4 sm:$0xff]  }
 0x1e9   : > { %3269 = vmatpush1.bf16.msra.mxu1 %v4714_v6  ;;  %v2968_v18 = vpop.f32.mrb[6].mxu1  ;;  %v5685_v20 = vadd.f32 %v2964_v10, %v2924_v11  ;;  %v2928_v22 = vpop.f32.mrb[7].mxu0  ;;  %3229 = vmatprep.subr.bf16.mxu0 %v4719_v7  ;;  %v4795_v6 = vld [vmem:[%s5247_s13 + $0xc44] ss:$8 sps:$4 sm:$0xff]   ;;  %v4793_v7 = vld [vmem:[%s5247_s13 + $0xc40] ss:$8 sps:$4 sm:$0xff]  }
 0x1ea   : > { %3270 = vmatprep.subr.bf16.mxu1 %v4722_v8  ;;  %v2969_v60 = vpop.f32.mrb[7].mxu1  ;;  %v5689_v24 = vadd.f32 %v2966_v13, %v2926_v14  ;;  %v4798_v8 = vld [vmem:[%s5247_s13 + $0xc54] ss:$8 sps:$4 sm:$0xff]   ;;  %v4801_v10 = vld [vmem:[%s5247_s13 + $0xc64] ss:$8 sps:$4 sm:$0xff]  }
 0x1eb   : > { %v4799_v18 = vld [vmem:[%s5247_s13 + $0xc60] ss:$8 sps:$4 sm:$0xff]   ;;  %v4804_v60 = vld [vmem:[%s5247_s13 + $0xc74] ss:$8 sps:$4 sm:$0xff]  }
 0x1ec   : > { %3230 = vmatpush1.bf16.msra.mxu0 %v4717_v16 }
 0x1ed   : > { %3271 = vmatpush1.bf16.msra.mxu1 %v4720_v17  ;;  %3231 = vmatprep.subr.bf16.mxu0 %v4725_v57 }
 0x1ee   : > { %3272 = vmatprep.subr.bf16.mxu1 %v4728_v23 }
 0x1f0   : > { %3232 = vmatpush1.bf16.msra.mxu0 %v4723_v27 }
 0x1f1   : > { %3273 = vmatpush1.bf16.msra.mxu1 %v4726_v28  ;;  %3233 = vmatprep.subr.bf16.mxu0 %v4731_v21  ;;  %v4802_v21 = vld [vmem:[%s5247_s13 + $0xc70] ss:$8 sps:$4 sm:$0xff]  }
 0x1f2   : > { %3274 = vmatprep.subr.bf16.mxu1 %v4734_v29  ;;  %v4805_v29 = vld [vmem:[%s5240_s14 + $0x60] ss:$0 sps:$4 sm:$0xff]  }
 0x1f4   : > { %3234 = vmatpush1.bf16.msra.mxu0 %v4729_v31 }
 0x1f5   : > { %3275 = vmatpush1.bf16.msra.mxu1 %v4732_v32  ;;  %3235 = vmatprep.subr.bf16.mxu0 %v4737_v33 }
 0x1f6   : > { %3276 = vmatprep.subr.bf16.mxu1 %v4740_v34 }
 0x1f8   : > { %3236 = vmatpush1.bf16.msra.mxu0 %v4735_v25 }
 0x1f9   : > { %3277 = vmatpush1.bf16.msra.mxu1 %v4738_v26  ;;  %3237 = vmatprep.subr.bf16.mxu0 %v4743_v35 }
 0x1fa   : > { %3278 = vmatprep.subr.bf16.mxu1 %v4746_v36 }
 0x1fc   : > { %3238 = vmatpush1.bf16.msra.mxu0 %v4741_v37 }
 0x1fd   : > { %3279 = vmatpush1.bf16.msra.mxu1 %v4744_v38  ;;  %3239 = vmatprep.subr.bf16.mxu0 %v4749_v39 }
 0x1fe   : > { %3280 = vmatprep.subr.bf16.mxu1 %v4752_v40 }
 0x200   : > { %3240 = vmatpush1.bf16.msra.mxu0 %v4747_v41 }
 0x201   : > { %3281 = vmatpush1.bf16.msra.mxu1 %v4750_v42  ;;  %3241 = vmatprep.subr.bf16.mxu0 %v4755_v43 }
 0x202   : > { %3282 = vmatprep.subr.bf16.mxu1 %v4758_v44 }
 0x204   : > { %3242 = vmatpush1.bf16.msra.mxu0 %v4753_v47 }
 0x205   : > { %3283 = vmatpush1.bf16.msra.mxu1 %v4756_v48  ;;  %3243 = vmatprep.subr.bf16.mxu0 %v4761_v49 }
 0x206   : > { %3284 = vmatprep.subr.bf16.mxu1 %v4764_v50 }
 0x208   : > { %3244 = vmatpush1.bf16.msra.mxu0 %v4759_v19 }
 0x209   : > { %3285 = vmatpush1.bf16.msra.mxu1 %v4762_v30  ;;  %3245 = vmatprep.subr.bf16.mxu0 %v4767_v51 }
 0x20a   : > { %3286 = vmatprep.subr.bf16.mxu1 %v4770_v52 }
 0x20c   : > { %3246 = vmatpush1.bf16.msra.mxu0 %v4765_v53 }
 0x20d   : > { %3287 = vmatpush1.bf16.msra.mxu1 %v4768_v54  ;;  %3247 = vmatprep.subr.bf16.mxu0 %v4773_v55 }
 0x20e   : > { %3288 = vmatprep.subr.bf16.mxu1 %v4776_v56 }
 0x210   : > { %3248 = vmatpush1.bf16.msra.mxu0 %v4771_v58 }
 0x211   : > { %3289 = vmatpush1.bf16.msra.mxu1 %v4774_v59  ;;  %3299 = vmatprep.subr.bf16.mxu0 %v4781_v61 }
 0x213   : > { %3250 = vmatmul.mubr.bf16.vlgmr.msra.gmra.mrb[20].mxu0 %v3619_v62 }
 0x214   : > { %3291 = vmatmul.mubr.bf16.vlgmr.msra.gmra.mrb[20].mxu1 %v3621_v63  ;;  %3300 = vmatpush1.bf16.msra.mxu0 %v4779_v0 }
 0x215   : > { %3331 = vmatprep.mubr.bf16.mxu0 %v5015_v3  ;;  %3301 = vmatprep.subr.bf16.mxu0 %v4786_v1  ;;  %v304_v1 = vld [vmem:[#allocation2] sm:$0xff] }
 0x218   : > { %3302 = vmatpush1.bf16.msra.mxu0 %v4784_v2 }
 0x219   : > { %3303 = vmatprep.subr.bf16.mxu0 %v4789_v45  ;;  %v305_v45 = vld [vmem:[#allocation2 + $0x8] sm:$0xff] }
 0x21c   : > { %3304 = vmatpush1.bf16.msra.mxu0 %v4787_v46 }
 0x21d   : > { %3305 = vmatprep.subr.bf16.mxu0 %v4792_v4 }
 0x220   : > { %3306 = vmatpush1.bf16.msra.mxu0 %v4790_v5 }
 0x221   : > { %3307 = vmatprep.subr.bf16.mxu0 %v4795_v6 }
 0x224   : > { %3308 = vmatpush1.bf16.msra.mxu0 %v4793_v7 }
 0x225   : > { %3309 = vmatprep.subr.bf16.mxu0 %v4798_v8 }
 0x226   : > { %v3005_v11 = vpop.f32.mrb[8].mxu0 }
 0x227   : > { %v3046_v12 = vpop.f32.mrb[8].mxu1  ;;  %v3006_v13 = vadd.f32 %v3005_v11, %v5685_v20  ;;  %v3007_v14 = vpop.f32.mrb[9].mxu0  ;;  %v3366_v11 = vld [vmem:[%s5884_s3] sm:$0xff] (!%p4024_p12) }
 0x228   : > { %v3048_v15 = vpop.f32.mrb[9].mxu1  ;;  %v3008_v16 = vadd.f32 %v3007_v14, %v5689_v24  ;;  %v3009_v17 = vpop.f32.mrb[10].mxu0  ;;  %3310 = vmatpush1.bf16.msra.mxu0 %v4796_v9  ;;  %v3382_v9 = vld [vmem:[%s5884_s3 + $0x80] sm:$0xff] (!%p4024_p12)  ;;  %v3367_v14 = vld [vmem:[%s5884_s3 + $0x8] sm:$0xff] (!%p4024_p12) }
 0x229   : > { %v3050_v22 = vpop.f32.mrb[10].mxu1  ;;  %v3047_v57 = vadd.f32 %v3046_v12, %v3006_v13  ;;  %v3010_v23 = vpop.f32.mrb[11].mxu0  ;;  %3311 = vmatprep.subr.bf16.mxu0 %v4801_v10  ;;  %v3383_v10 = vld [vmem:[%s5884_s3 + $0x88] sm:$0xff] (!%p4024_p12)  ;;  %v3352_v12 = vlaneseq (!%p4024_p12)  ;;  %v4071_v17 = vpack.c.bf16 (!%p4024_p12), %v3367_v14, %v3366_v11 }
 0x22a   : > { %v3051_v27 = vpop.f32.mrb[11].mxu1  ;;  %v3049_v28 = vadd.f32 %v3048_v15, %v3008_v16  ;;  %v4069_v13 = vpack.c.bf16 (!%p4024_p12), %v3383_v10, %v3382_v9  ;;  %v3384_v15 = vld [vmem:[%s5884_s3 + $0x90] sm:$0xff] (!%p4024_p12)  ;;  %v3385_v16 = vld [vmem:[%s5884_s3 + $0x98] sm:$0xff] (!%p4024_p12)  ;;  %v3386_v23 = vld [vmem:[%s5884_s3 + $0xa0] sm:$0xff] (!%p4024_p12) }
 0x22b   : > { %v3368_v22 = vld [vmem:[%s5884_s3 + $0x10] sm:$0xff] (!%p4024_p12) }
 0x22c   : > { %3312 = vmatpush1.bf16.msra.mxu0 %v4799_v18  ;;  %v4073_v18 = vpack.c.bf16 (!%p4024_p12), %v3385_v16, %v3384_v15 }
 0x22d   : > { %3313 = vmatprep.subr.bf16.mxu0 %v4804_v60  ;;  %v3387_v60 = vld [vmem:[%s5884_s3 + $0xa8] sm:$0xff] (!%p4024_p12) }
 0x230   : > { %3314 = vmatpush1.bf16.msra.mxu0 %v4802_v21  ;;  %v4077_v21 = vpack.c.bf16 (!%p4024_p12), %v3387_v60, %v3386_v23 }
 0x231   : > { %4070 = vmatprep.subr.bf16.mxu0 (!%p4024_p12), %v4069_v13 }
 0x233   : > { %3332 = vmatmul.mubr.bf16.vlgmr.msra.gmra.mrb[24].mxu0 %v4805_v29  ;;  %v3370_v29 = vld [vmem:[%s5884_s3 + $0x20] sm:$0xff] (!%p4024_p12) }
 0x234   : > { %4072 = vmatpush3.bf16.msra.mxu0 (!%p4024_p12), %v4071_v17 }
 0x235   : > { %4074 = vmatprep.subr.bf16.mxu0 (!%p4024_p12), %v4073_v18 }
 0x266   : > { %v3087_v20 = vpop.f32.mrb[12].mxu0 }
 0x267   : > { %v3128_v31 = vpop.f32.mrb[12].mxu1  ;;  %v3088_v32 = vadd.f32 %v3087_v20, %v3047_v57  ;;  %v3089_v24 = vpop.f32.mrb[13].mxu0  ;;  %v3369_v57 = vld [vmem:[%s5884_s3 + $0x18] sm:$0xff] (!%p4024_p12)  ;;  %v3371_v20 = vld [vmem:[%s5884_s3 + $0x28] sm:$0xff] (!%p4024_p12) }
 0x268   : > { %v3130_v33 = vpop.f32.mrb[13].mxu1  ;;  %v3090_v34 = vadd.f32 %v3089_v24, %v3049_v28  ;;  %v3091_v25 = vpop.f32.mrb[14].mxu0  ;;  %v4075_v27 = vpack.c.bf16 (!%p4024_p12), %v3369_v57, %v3368_v22  ;;  %v3353_v28 = vshrl.u32 (!%p4024_p12), %v3352_v12, 7  ;;  %v4079_v24 = vpack.c.bf16 (!%p4024_p12), %v3371_v20, %v3370_v29 }
 0x269   : > { %v3132_v26 = vpop.f32.mrb[14].mxu1  ;;  %v3129_v35 = vadd.f32 %v3128_v31, %v3088_v32  ;;  %v3092_v36 = vpop.f32.mrb[15].mxu0  ;;  %v3388_v31 = vld [vmem:[%s5884_s3 + $0xb0] sm:$0xff] (!%p4024_p12)  ;;  %v3389_v32 = vld [vmem:[%s5884_s3 + $0xb8] sm:$0xff] (!%p4024_p12) }
 0x26a   : > { %v3133_v37 = vpop.f32.mrb[15].mxu1  ;;  %v3131_v38 = vadd.f32 %v3130_v33, %v3090_v34  ;;  %4076 = vmatpush3.bf16.msra.mxu0 (!%p4024_p12), %v4075_v27  ;;  %v3358_v33 = vsub.s32 (!%p4024_p12), 1, %v3353_v28  ;;  %v4081_v34 = vpack.c.bf16 (!%p4024_p12), %v3389_v32, %v3388_v31  ;;  %v3372_v25 = vld [vmem:[%s5884_s3 + $0x30] sm:$0xff] (!%p4024_p12)  ;;  %v3373_v26 = vld [vmem:[%s5884_s3 + $0x38] sm:$0xff] (!%p4024_p12)  ;;  %v3391_v36 = vld [vmem:[%s5884_s3 + $0xc8] sm:$0xff] (!%p4024_p12) }
 0x26b   : > { %4078 = vmatprep.subr.bf16.mxu0 (!%p4024_p12), %v4077_v21  ;;  %v3354_v37 = vsub.s32 (!%p4024_p12), 0, %v3353_v28 }
 0x26e   : > { %4080 = vmatpush3.bf16.msra.mxu0 (!%p4024_p12), %v4079_v24 }
 0x26f   : > { %4082 = vmatprep.subr.bf16.mxu0 (!%p4024_p12), %v4081_v34 }
 0x2a6   : > { %v3169_v39 = vpop.f32.mrb[16].mxu0 }
 0x2a7   : > { %v3210_v40 = vpop.f32.mrb[16].mxu1  ;;  %v3170_v41 = vadd.f32 %v3169_v39, %v3129_v35  ;;  %v3171_v42 = vpop.f32.mrb[17].mxu0  ;;  %v3390_v35 = vld [vmem:[%s5884_s3 + $0xc0] sm:$0xff] (!%p4024_p12)  ;;  %v3350_v39 = vld [vmem:[#allocation8] sm:$0x3] (!%p4024_p12) }
 0x2a8   : > { %v3212_v43 = vpop.f32.mrb[17].mxu1  ;;  %v3172_v44 = vadd.f32 %v3171_v42, %v3131_v38  ;;  %v3173_v47 = vpop.f32.mrb[18].mxu0  ;;  %v4085_v42 = vpack.c.bf16 (!%p4024_p12), %v3391_v36, %v3390_v35 }
 0x2a9   : > { %v3214_v48 = vpop.f32.mrb[18].mxu1  ;;  %v3211_v49 = vadd.f32 %v3210_v40, %v3170_v41  ;;  %v3174_v50 = vpop.f32.mrb[19].mxu0  ;;  %v4083_v40 = vpack.c.bf16 (!%p4024_p12), %v3373_v26, %v3372_v25  ;;  %v3359_v41 = vrot.slane (!%p4024_p12), %v3350_v39, %v3358_v33  ;;  %v3392_v47 = vld [vmem:[%s5884_s3 + $0xd0] sm:$0xff] (!%p4024_p12) }
 0x2aa   : > { %v3215_v19 = vpop.f32.mrb[19].mxu1  ;;  %v3213_v30 = vadd.f32 %v3212_v43, %v3172_v44  ;;  %v3374_v43 = vld [vmem:[%s5884_s3 + $0x40] sm:$0xff] (!%p4024_p12)  ;;  %v3375_v44 = vld [vmem:[%s5884_s3 + $0x48] sm:$0xff] (!%p4024_p12)  ;;  %v3393_v48 = vld [vmem:[%s5884_s3 + $0xd8] sm:$0xff] (!%p4024_p12) }
 0x2ab   : > { %4084 = vmatpush3.bf16.msra.mxu0 (!%p4024_p12), %v4083_v40 }
 0x2ac   : > { %4086 = vmatprep.subr.bf16.mxu0 (!%p4024_p12), %v4085_v42 }
 0x2e6   : > { %v3251_v51 = vpop.f32.mrb[20].mxu0 }
 0x2e7   : > { %v3292_v52 = vpop.f32.mrb[20].mxu1  ;;  %v3252_v53 = vadd.f32 %v3251_v51, %v3211_v49  ;;  %v3253_v54 = vpop.f32.mrb[21].mxu0  ;;  %v3355_v49 = vrot.slane (!%p4024_p12), %v3350_v39, %v3354_v37  ;;  %v4089_v51 = vpack.c.bf16 (!%p4024_p12), %v3393_v48, %v3392_v47 }
 0x2e8   : > { %v3294_v55 = vpop.f32.mrb[21].mxu1  ;;  %v3254_v56 = vadd.f32 %v3253_v54, %v3213_v30  ;;  %v3255_v58 = vpop.f32.mrb[22].mxu0  ;;  %v4087_v30 = vpack.c.bf16 (!%p4024_p12), %v3375_v44, %v3374_v43  ;;  %v3394_v54 = vld [vmem:[%s5884_s3 + $0xe0] sm:$0xff] (!%p4024_p12) }
 0x2e9   : > { %v3296_v59 = vpop.f32.mrb[22].mxu1  ;;  %v3293_v61 = vadd.f32 %v3292_v52, %v3252_v53  ;;  %v3256_v62 = vpop.f32.mrb[23].mxu0  ;;  %v3376_v52 = vld [vmem:[%s5884_s3 + $0x50] sm:$0xff] (!%p4024_p12)  ;;  %v3377_v53 = vld [vmem:[%s5884_s3 + $0x58] sm:$0xff] (!%p4024_p12) }
 0x2ea   : > { %v3297_v63 = vpop.f32.mrb[23].mxu1  ;;  %v3295_v0 = vadd.f32 %v3294_v55, %v3254_v56  ;;  %v3395_v55 = vld [vmem:[%s5884_s3 + $0xe8] sm:$0xff] (!%p4024_p12)  ;;  %4088 = vmatpush3.bf16.msra.mxu0 (!%p4024_p12), %v4087_v30  ;;  %v4091_v58 = vpack.c.bf16 (!%p4024_p12), %v3377_v53, %v3376_v52 }
 0x2eb   : > { %4090 = vmatprep.subr.bf16.mxu0 (!%p4024_p12), %v4089_v51  ;;  %v4093_v59 = vpack.c.bf16 (!%p4024_p12), %v3395_v55, %v3394_v54  ;;  %v3379_v62 = vld [vmem:[%s5884_s3 + $0x68] sm:$0xff] (!%p4024_p12)  ;;  %v3396_v63 = vld [vmem:[%s5884_s3 + $0xf0] sm:$0xff] (!%p4024_p12) }
 0x2ee   : > { %4092 = vmatpush3.bf16.msra.mxu0 (!%p4024_p12), %v4091_v58 }
 0x2ef   : > { %4094 = vmatprep.subr.bf16.mxu0 (!%p4024_p12), %v4093_v59 }
 0x306   : > { %v3333_v2 = vpop.f32.mrb[24].mxu0  ;;  %3347 = sbr.rel (%p4024_p12) target bundleno = 1334 (0x536), region = 64 }
 0x307   : > { %v3334_v3 = vadd.f32 %v3333_v2, %v3293_v61  ;;  %v3335_v46 = vpop.f32.mrb[25].mxu0  ;;  %v3378_v61 = vld [vmem:[%s5884_s3 + $0x60] sm:$0xff] (!%p4024_p12) }
 0x308   : > { %v3336_v4 = vadd.f32 %v3335_v46, %v3295_v0  ;;  %v3337_v5 = vpop.f32.mrb[26].mxu0  ;;  %v3397_v0 = vld [vmem:[%s5884_s3 + $0xf8] sm:$0xff] (!%p4024_p12) }
 0x309   : > { %v3340_v6 = vadd.f32 %v3334_v3, %v304_v1  ;;  %v3338_v7 = vpop.f32.mrb[27].mxu0  ;;  %v4095_v1 = vpack.c.bf16 (!%p4024_p12), %v3379_v62, %v3378_v61  ;;  %v4097_v2 = vpack.c.bf16 (!%p4024_p12), %v3397_v0, %v3396_v63  ;;  %v3380_v3 = vld [vmem:[%s5884_s3 + $0x70] sm:$0xff] (!%p4024_p12) }
 0x30a   : > { %v3341_v8 = vadd.f32 %v3336_v4, %v305_v45  ;;  %v3381_v45 = vld [vmem:[%s5884_s3 + $0x78] sm:$0xff] (!%p4024_p12) }
 0x30b   : > { %3342 = vst [vmem:[#allocation2] sm:$0xff] %v3340_v6  ;;  %4096 = vmatpush3.bf16.msra.mxu0 (!%p4024_p12), %v4095_v1  ;;  %v4099_v4 = vpack.c.bf16 (!%p4024_p12), %v3381_v45, %v3380_v3 }
 0x30c   : > { %3343 = vst [vmem:[#allocation2 + $0x8] sm:$0xff] %v3341_v8  ;;  %4098 = vmatprep.subr.bf16.mxu0 (!%p4024_p12), %v4097_v2  ;;  %v4025_v8 = vld [vmem:[#allocation9] ss:$0 sm:$0xff] (!%p4024_p12) }
 0x30f   : > { %4100 = vmatpush3.bf16.msra.mxu0 %v4099_v4 }
 0x312   : > { %v3348_v19 = vld [vmem:[#allocation2] sm:$0xff] }
 0x313   : > { %v3349_v38 = vld [vmem:[#allocation2 + $0x8] sm:$0xff]  ;;  %v3362_v56 = vadd.f32 %v3355_v49, %v3348_v19 }
 0x314   : > { %v3363_v50 = vadd.f32 %v3359_v41, %v3349_v38 }
 0x316   : > { %4806 = vtanh.f32 %v3363_v50 }
 0x317   : > { %4808 = vtanh.f32 %v3362_v56 }
 0x320   : > { %v4807_v46 = vpop.eup %4806 }
 0x321   : > { %3469 = vmatprep.mubr.f32.mxu0 %v4807_v46  ;;  %v4809_v5 = vpop.eup %4808 }
 0x322   : > { %3470 = vmatmul.mubr.f32.vlgmr.msra.gmra.mrb[0].mxu0 %v4809_v5 }
 0x3f5   : > { %v4066_v6 = vpop.f32.mrb[0].mxu0 }
 0x3f6   : > { %v4067_v7 = vpop.f32.mrb[1].mxu0 }
 0x3f7   : > { %v4068_v9 = vadd.f32 %v4067_v7, %v4066_v6 }
 0x3f9   : > { %v3472_v10 = vadd.f32 %v4068_v9, %v4025_v8 }
 0x3fb   : > { %v3476_v11 = vsel %vm3475_vm0, %v3472_v10, -inf }
 0x3fc   : > { %3477 = vmax.xlane.f32.xlu0 %v3476_v11 }
 0x489   : > { %v3478_v12 = vpop.xlane.xlu0 %3477 }
 0x48a   : > { %v3479_v13 = vsub.f32 %v3472_v10, %v3478_v12 }
 0x48c   : > { %v3480_v14 = vmul.f32 1.442695, %v3479_v13 }
 0x48e   : > { %4810 = vpow2.f32 %v3480_v14 }
 0x498   : > { %v4811_v15 = vpop.eup %4810 }
 0x499   : > { %v3482_v16 = vsel %vm3475_vm0, %v4811_v15, 0.0 }
 0x49a   : > { %3483 = vadd.xlane.f32.xlu0 %v3482_v16 }
 0x527   : > { %v3484_v17 = vpop.xlane.xlu0 %3483 }
 0x528   : > { %4812 = vrcp.f32 %v3484_v17 }
 0x532   : > { %v4813_v18 = vpop.eup %4812 }
 0x533   : > { %v3486_v22 = vmul.f32 %v4813_v18, %v4811_v15 }
 0x535   : > { %3487 = vst.msk [vmem:[#allocation11] sm:$0xff] %vm3475_vm0, %v3486_v22 }
 0x536 PF: > { %p4140_p0 = scmp.eq.s32.totalorder %s5066_s22, 1  ;;  %s5016_s25 = smov [#allocation11]  }
 0x537   : > { %s3495_s7 = sshll.u32 %s5016_s25, 4  ;;  %s3496_s7 = int_to_ptr.vmem [resolvable:$true] %s3495_s7 }
 0x538   : > { %s4930_s8 = scalar_lea.vmem %s3496_s7, 128  ;;  %p4937_p10 = scmp.lt.s32.totalorder %s3496_s7, %s3496_s7 }
 0x539   : > { %p4931_p2 = scmp.ne.s32.totalorder %s3496_s7, %s4930_s8  ;;  %p4938_p9 = scmp.lt.s32.totalorder %s4930_s8, %s4930_s8 }
 0x53b   : > { %p4932_p13 = pnand %p4931_p2, %p4140_p0  ;;  %p4939_p11 = por %p4938_p9, %p4937_p10 }
 0x53d   : > { %p4933_p3 = pneg %p4932_p13 }
 0x53f   : > { %p4940_p7 = pnand %p4939_p11, %p4933_p3 }
 0x541   : > { %4943 = shalt.err (!%p4940_p7)
}
 0x542   : > { %s4944_s27 = scalar_lea.hbm %s5886_s5, 128 }
 0x543   : > { %p4945_p8 = scmp.ne.s32.totalorder %s5886_s5, %s4944_s27  ;;  %p4950_p5 = scmp.lt.u32.totalorder %s4944_s27, %s5886_s5 }
 0x545   : > { %p4946_p1 = pnand %p4945_p8, %p4140_p0 }
 0x547   : > { %p4947_p4 = pneg %p4946_p1 }
 0x549   : > { %p4952_p6 = pnand %p4950_p5, %p4947_p4 }
 0x54b   : > { %4955 = shalt.err (!%p4952_p6)
}
 0x54c   : > { %4118 = dma.vmem_to_hbm [thread:$0]  (%p4140_p0), %s3496_s7, 128, %s5886_s5, [#allocation5]  }
 0x54d   : > { %4989 = dma.done.wait (%p4140_p0), [#allocation5], 128  }
 0x54e   : > { %4991 = vsyncadd (%p4140_p0), [#allocation5], 4294967168 }
 0x54f PF: > { %p20_p12 = scmp.ge.s32.totalorder %s5094_s30, 4   ;;  %s5901_s18 = smov %s4998_s19 }
 0x550   : > { %s5902_s19 = smov %s5002_s20  ;;  %s5903_s20 = smov %s5154_s29 }
 0x551   : > { %s5904_s21 = smov %s5094_s30  ;;  %22 = sbr.rel (!%p20_p12) target bundleno = 7 (0x7), region = 106 }
 0x558   :  { %3508 = vsyncpa [#allocation4], 1 }
 0x559   :  { %3510 = vsyncpa [#allocation4 + $0x1], 1 }
 0x55a   :  { %3511 = vsyncpa [#allocation7], 1 }
 0x55b   :  { %3513 = vsyncpa [#allocation7 + $0x1], 1 }
 0x55c   :  { %3514 = vsyncpa [#allocation10], 1 }
 0x55d   :  { %3515 = vsyncpa [#allocation5], 1 }
 0x55e   :  { %3517 = vsyncpa [#allocation5 + $0x1], 1 }

</bundles_post_ra>
